<compile_context>
chip_gen: v5e
topology: v5e:2x2
jax: 0.10.0
libtpu: 0.0.40
codegen_flags: <defaults>
</compile_context>

<pallas_src>
import functools

import jax
import jax.numpy as jnp
from jax.experimental import pallas as pl
from jax.experimental.pallas import tpu as pltpu

LN_EPS = 1e-5
_LANE = 128
_MIB = 1024 * 1024


def _round_up(x, m):
    return ((x + m - 1) // m) * m


def _num_tensorcores():
    """2 TensorCores per chip on v7x-class parts, 1 on v5e/v6e."""
    try:
        kind = jax.devices()[0].device_kind.lower()
    except Exception:
        return 1
    return 2 if "v7" in kind else 1


def _discriminator_kernel(obs_ref,
                          w0_ref, b0_ref, g_ref, beta_ref,
                          w1_ref, b1_ref,
                          w2_ref, b2_ref,
                          w3_ref, b3_ref,
                          out_ref, acc_ref, *, inv_feat):
    k = pl.program_id(1)

    @pl.when(k == 0)
    def _init():
        acc_ref[...] = jnp.zeros_like(acc_ref)

    # --- trunk matmul, streamed over the K (repr_dim) grid axis ---
    x = obs_ref[...].astype(jnp.bfloat16)
    acc_ref[...] += jnp.dot(x, w0_ref[...], preferred_element_type=jnp.float32)

    @pl.when(k == pl.num_programs(1) - 1)
    def _finalize():
        h = acc_ref[...] + b0_ref[...]

        # One-pass LN statistics. Padded feature lanes of h are exactly zero (zero-padded
        # w0 columns / b0), so summing over the padded axis and dividing by the REAL
        # feature_dim (inv_feat) gives exact statistics of the un-padded model.
        s1 = jnp.sum(h, axis=-1, keepdims=True)
        s2 = jnp.sum(h * h, axis=-1, keepdims=True)
        mean = s1 * inv_feat
        var = jnp.maximum(s2 * inv_feat - mean * mean, 0.0)  # clamp: one-pass var safety
        h = (h - mean) * jax.lax.rsqrt(var + LN_EPS)
        # gamma/beta are zero in padded lanes -> padded activations stay exactly 0.
        # TODO(synk): on v6e/v7x this gamma/beta + tanh epilogue could run in bf16
        # (bf16 VALU/EUP); kept f32 so the identical kernel stays exact on v5e.
        h = jnp.tanh(h * g_ref[...] + beta_ref[...])

        # --- mlp head: Linear -> ReLU -> Linear -> ReLU -> Linear(->1) ---
        h = h.astype(jnp.bfloat16)
        x1 = jnp.dot(h, w1_ref[...], preferred_element_type=jnp.float32) + b1_ref[...]
        x1 = jnp.maximum(x1, 0.0).astype(jnp.bfloat16)
        x2 = jnp.dot(x1, w2_ref[...], preferred_element_type=jnp.float32) + b2_ref[...]
        x2 = jnp.maximum(x2, 0.0)

        # Final hidden -> 1 projection on the VPU + lane reduction. Padded hidden lanes
        # of x2 and w3 are exactly zero.
        mu = jnp.sum(x2 * w3_ref[...], axis=-1, keepdims=True) + b3_ref[...]
        out_ref[...] = mu.astype(out_ref.dtype)


def init_params(key, repr_dim, feature_dim, hidden_dim):
    """Deterministic synthetic init (stands in for weight_init / orthogonal init)."""
    ks = jax.random.split(key, 4)

    def lin(k, din, dout):
        scale = 1.0 / jnp.sqrt(jnp.float32(din))
        w = jax.random.uniform(k, (din, dout), jnp.float32, -scale, scale)  # (in, out)
        b = jnp.zeros((1, dout), jnp.float32)
        return w, b

    w0, b0 = lin(ks[0], repr_dim, feature_dim)
    w1, b1 = lin(ks[1], feature_dim, hidden_dim)
    w2, b2 = lin(ks[2], hidden_dim, hidden_dim)
    w3, b3 = lin(ks[3], hidden_dim, 1)
    return dict(
        w0=w0, b0=b0,
        ln_g=jnp.ones((1, feature_dim), jnp.float32),
        ln_b=jnp.zeros((1, feature_dim), jnp.float32),
        w1=w1, b1=b1, w2=w2, b2=b2, w3=w3, b3=b3,
    )


def prepare_kernel_params(p):
    """Zero-pad feature/hidden dims to lane multiples; cast matmul weights to bf16."""
    repr_dim, feature_dim = p["w0"].shape
    hidden_dim = p["w1"].shape[1]
    F = _round_up(feature_dim, _LANE)
    H = _round_up(hidden_dim, _LANE)

    def pad2(a, rows, cols, dtype):
        out = jnp.zeros((rows, cols), dtype)
        return out.at[: a.shape[0], : a.shape[1]].set(a.astype(dtype))

    kp = dict(
        w0=pad2(p["w0"], repr_dim, F, jnp.bfloat16),
        b0=pad2(p["b0"], 1, F, jnp.float32),
        ln_g=pad2(p["ln_g"], 1, F, jnp.float32),   # zeros in padded lanes (load-bearing!)
        ln_b=pad2(p["ln_b"], 1, F, jnp.float32),   # zeros in padded lanes (load-bearing!)
        w1=pad2(p["w1"], F, H, jnp.bfloat16),
        b1=pad2(p["b1"], 1, H, jnp.float32),
        w2=pad2(p["w2"], H, H, jnp.bfloat16),
        b2=pad2(p["b2"], 1, H, jnp.float32),
        w3=pad2(p["w3"].T, 1, H, jnp.float32),     # row layout for VPU mul + lane reduce
        b3=p["b3"].reshape(1, 1).astype(jnp.float32),
    )
    # Silent invariant the kernel relies on: padded lanes of b0/gamma/beta must be 0 so the
    # padded LN activations entering the MLP are exactly 0.
    if F > feature_dim:
        assert bool(jnp.all(kp["b0"][:, feature_dim:] == 0))
        assert bool(jnp.all(kp["ln_g"][:, feature_dim:] == 0))
        assert bool(jnp.all(kp["ln_b"][:, feature_dim:] == 0))
    return kp, feature_dim


def discriminator_forward(obs, kp, feature_dim, *, tile_b=512, max_tile_k=512):
    """obs: (B, repr_dim) float32 or bfloat16.  kp: padded/bf16 kernel params."""
    B, repr_dim = obs.shape
    F = kp["w0"].shape[1]
    H = kp["w1"].shape[1]

    # Batch tile: big (amortize ~0.35us/step grid overhead), but keep >= 2 grid steps on
    # megacore (2-TC) parts so the "parallel" batch axis feeds both TensorCores.
    n_cores = _num_tensorcores()
    tile_b = max(1, min(tile_b, B))
    if n_cores > 1 and B > 8:
        tile_b = min(tile_b, _round_up(pl.cdiv(B, n_cores), 8))

    # K (repr_dim) streaming tile for the trunk matmul. At production repr_dim this keeps
    # only (tile_k, F) of w0 resident per buffer instead of the whole matrix.
    if repr_dim <= max_tile_k:
        tile_k = repr_dim
    else:
        tile_k = next((c for c in (512, 384, 256, 128) if repr_dim % c == 0), repr_dim)
        # TODO(synk): pad repr_dim in the wrapper when it has no lane-aligned divisor.

    num_b = pl.cdiv(B, tile_b)
    num_k = pl.cdiv(repr_dim, tile_k)

    resident = pl.Buffered(1)                           # constant index -> single buffer
    w0_mode = pl.Buffered(1) if num_k == 1 else None    # streamed over K -> default (2) buffers
    # TODO(synk): consider pl.Buffered(3) on obs/w0 when num_k is large (deeper K pipeline).

    in_specs = [
        pl.BlockSpec((tile_b, tile_k), lambda i, k: (i, k)),                    # obs (streamed)
        pl.BlockSpec((tile_k, F), lambda i, k: (k, 0), pipeline_mode=w0_mode),  # w0
        pl.BlockSpec((1, F), lambda i, k: (0, 0), pipeline_mode=resident),      # b0
        pl.BlockSpec((1, F), lambda i, k: (0, 0), pipeline_mode=resident),      # ln_g
        pl.BlockSpec((1, F), lambda i, k: (0, 0), pipeline_mode=resident),      # ln_b
        pl.BlockSpec((F, H), lambda i, k: (0, 0), pipeline_mode=resident),      # w1
        pl.BlockSpec((1, H), lambda i, k: (0, 0), pipeline_mode=resident),      # b1
        pl.BlockSpec((H, H), lambda i, k: (0, 0), pipeline_mode=resident),      # w2
        pl.BlockSpec((1, H), lambda i, k: (0, 0), pipeline_mode=resident),      # b2
        pl.BlockSpec((1, H), lambda i, k: (0, 0), pipeline_mode=resident),      # w3 (row)
        pl.BlockSpec((1, 1), lambda i, k: (0, 0), pipeline_mode=resident),      # b3
    ]
    # TODO(synk): if profiling shows masked-vst store stalls, emit a lane-dense
    # (num_b, tile_b) output slab and reshape to (B, 1) in the wrapper.
    out_spec = pl.BlockSpec((tile_b, 1), lambda i, k: (i, 0))

    args = (obs,
            kp["w0"], kp["b0"], kp["ln_g"], kp["ln_b"],
            kp["w1"], kp["b1"], kp["w2"], kp["b2"],
            kp["w3"], kp["b3"])

    weight_names = ("w0", "b0", "ln_g", "ln_b", "w1", "b1", "w2", "b2", "w3", "b3")
    weight_bytes = sum(int(kp[n].size) * kp[n].dtype.itemsize for n in weight_names)
    obs_bytes = int(obs.size) * obs.dtype.itemsize
    flops = 2 * B * (repr_dim * F + F * H + H * H + H)
    cost = pl.CostEstimate(flops=flops, transcendentals=B * F,
                           bytes_accessed=weight_bytes + obs_bytes + B * 4)

    # VMEM budget derived from actual footprints (2x headroom for live intermediates),
    # capped conservatively on v7x (64 MiB physical per TC) and more generously on v5e/v6e.
    w0_full_bytes = int(kp["w0"].size) * kp["w0"].dtype.itemsize
    w0_bufs = 1 if num_k == 1 else 2
    need = ((weight_bytes - w0_full_bytes)                       # resident weights, 1 buffer each
            + tile_k * F * 2 * w0_bufs                           # w0 buffers (bf16)
            + tile_b * tile_k * obs.dtype.itemsize * 2           # obs double-buffer
            + tile_b * 4 * 2                                     # out double-buffer
            + tile_b * F * 4                                     # f32 trunk accumulator
            + tile_b * max(F, H) * 4 * 4)                        # live f32 intermediates
    cap = 48 * _MIB if n_cores > 1 else 96 * _MIB
    vmem_limit = int(min(max(2 * need, 32 * _MIB), cap))

    kernel = functools.partial(_discriminator_kernel, inv_feat=1.0 / float(feature_dim))

    return pl.pallas_call(
        kernel,
        out_shape=jax.ShapeDtypeStruct((B, 1), jnp.float32),
        grid=(num_b, num_k),
        in_specs=in_specs,
        out_specs=out_spec,
        scratch_shapes=[pltpu.VMEM((tile_b, F), jnp.float32)],
        compiler_params=pltpu.CompilerParams(
            dimension_semantics=("parallel", "arbitrary"),
            vmem_limit_bytes=vmem_limit,
        ),
        cost_estimate=cost,
    )(*args)


def discriminator_ref(obs, p):
    """Plain-JAX reference matching the kernel's compute precision (bf16 in, f32 acc)."""
    bf16, f32 = jnp.bfloat16, jnp.float32

    def bdot(x, w):
        return jnp.dot(x.astype(bf16), w.astype(bf16), preferred_element_type=f32)

    h = bdot(obs, p["w0"]) + p["b0"]
    mean = h.mean(-1, keepdims=True)
    var = ((h - mean) ** 2).mean(-1, keepdims=True)
    h = (h - mean) * jax.lax.rsqrt(var + LN_EPS) * p["ln_g"] + p["ln_b"]
    h = jnp.tanh(h)
    x1 = jnp.maximum(bdot(h, p["w1"]) + p["b1"], 0.0)
    x2 = jnp.maximum(bdot(x1, p["w2"]) + p["b2"], 0.0)
    return x2 @ p["w3"] + p["b3"]


if __name__ == "__main__":
    B, REPR_DIM, FEATURE_DIM, HIDDEN_DIM = 256, 64, 32, 32

    key = jax.random.PRNGKey(0)
    k_obs, k_par = jax.random.split(key)
    obs_f32 = jax.random.normal(k_obs, (B, REPR_DIM), jnp.float32)
    # obs is "stored" bf16 upstream: it is the only streamed operand, so this halves the
    # dominant HBM traffic (no extra cast op lives inside the forward wrapper).
    obs_bf16 = obs_f32.astype(jnp.bfloat16)

    params = init_params(k_par, REPR_DIM, FEATURE_DIM, HIDDEN_DIM)
    kparams, feat_dim = prepare_kernel_params(params)

    mu = discriminator_forward(obs_bf16, kparams, feat_dim)
    mu = jax.block_until_ready(mu)

    mu_ref = discriminator_ref(obs_f32, params)
    assert mu.shape == (B, 1)
    max_err = float(jnp.max(jnp.abs(mu - mu_ref)))
    assert bool(jnp.allclose(mu, mu_ref, atol=2e-2, rtol=2e-2)), f"max abs err {max_err}"

    print("KERNEL_OK")
</pallas_src>

<mosaic_0001>
module attributes {stable_mosaic.version = 11 : i64} {
  func.func @_discriminator_kernel(%arg0: i32, %arg1: i32, %arg2: memref<256x64xbf16, #tpu.memory_space<vmem>>, %arg3: memref<64x128xbf16, #tpu.memory_space<vmem>>, %arg4: memref<1x128xf32, #tpu.memory_space<vmem>>, %arg5: memref<1x128xf32, #tpu.memory_space<vmem>>, %arg6: memref<1x128xf32, #tpu.memory_space<vmem>>, %arg7: memref<128x128xbf16, #tpu.memory_space<vmem>>, %arg8: memref<1x128xf32, #tpu.memory_space<vmem>>, %arg9: memref<128x128xbf16, #tpu.memory_space<vmem>>, %arg10: memref<1x128xf32, #tpu.memory_space<vmem>>, %arg11: memref<1x128xf32, #tpu.memory_space<vmem>>, %arg12: memref<1x1xf32, #tpu.memory_space<vmem>>, %arg13: memref<256x1xf32, #tpu.memory_space<vmem>>, %arg14: memref<256x128xf32, #tpu.memory_space<vmem>>) attributes {dimension_semantics = [#tpu.dimension_semantics<parallel>, #tpu.dimension_semantics<arbitrary>], iteration_bounds = array<i64: 1, 1>, scalar_prefetch = 0 : i64, scratch_operands = 1 : i64, tpu.core_type = #tpu.core_type<tc>, window_params = [{transform_indices = @transform_0, window_bounds = array<i64: 256, 64>}, {pipeline_mode = #tpu.pipeline_mode<synchronous>, transform_indices = @transform_1, window_bounds = array<i64: 64, 128>}, {pipeline_mode = #tpu.pipeline_mode<synchronous>, transform_indices = @transform_2, window_bounds = array<i64: 1, 128>}, {pipeline_mode = #tpu.pipeline_mode<synchronous>, transform_indices = @transform_3, window_bounds = array<i64: 1, 128>}, {pipeline_mode = #tpu.pipeline_mode<synchronous>, transform_indices = @transform_4, window_bounds = array<i64: 1, 128>}, {pipeline_mode = #tpu.pipeline_mode<synchronous>, transform_indices = @transform_5, window_bounds = array<i64: 128, 128>}, {pipeline_mode = #tpu.pipeline_mode<synchronous>, transform_indices = @transform_6, window_bounds = array<i64: 1, 128>}, {pipeline_mode = #tpu.pipeline_mode<synchronous>, transform_indices = @transform_7, window_bounds = array<i64: 128, 128>}, {pipeline_mode = #tpu.pipeline_mode<synchronous>, transform_indices = @transform_8, window_bounds = array<i64: 1, 128>}, {pipeline_mode = #tpu.pipeline_mode<synchronous>, transform_indices = @transform_9, window_bounds = array<i64: 1, 128>}, {pipeline_mode = #tpu.pipeline_mode<synchronous>, transform_indices = @transform_10, window_bounds = array<i64: 1, 1>}, {transform_indices = @transform_11, window_bounds = array<i64: 256, 1>}]} {
    %c0_i32 = arith.constant 0 : i32
    %0 = arith.cmpi eq, %arg1, %c0_i32 : i32
    %1 = arith.extui %0 : i1 to i32
    %c0_i32_0 = arith.constant 0 : i32
    %2 = arith.cmpi ne, %1, %c0_i32_0 : i32
    scf.if %2 {
      %cst_10 = arith.constant 0.000000e+00 : f32
      %12 = vector.broadcast %cst_10 : f32 to vector<256x128xf32>
      %c0_11 = arith.constant 0 : index
      %c0_12 = arith.constant 0 : index
      %13 = vector.load %arg14[%c0_11, %c0_12] : memref<256x128xf32, #tpu.memory_space<vmem>>, vector<256x128xf32>
      tpu.vector_store %arg14[%c0_11, %c0_12], %12 {strides = array<i32>} : memref<256x128xf32, #tpu.memory_space<vmem>>, vector<256x128xf32>,
    } else {
    }
    %c0 = arith.constant 0 : index
    %c0_1 = arith.constant 0 : index
    %3 = vector.load %arg2[%c0, %c0_1] : memref<256x64xbf16, #tpu.memory_space<vmem>>, vector<256x64xbf16>
    %c0_2 = arith.constant 0 : index
    %c0_3 = arith.constant 0 : index
    %4 = vector.load %arg14[%c0_2, %c0_3] : memref<256x128xf32, #tpu.memory_space<vmem>>, vector<256x128xf32>
    %c0_4 = arith.constant 0 : index
    %c0_5 = arith.constant 0 : index
    %5 = vector.load %arg3[%c0_4, %c0_5] : memref<64x128xbf16, #tpu.memory_space<vmem>>, vector<64x128xbf16>
    %cst = arith.constant dense<0.000000e+00> : vector<256x128xf32>
    %6 = tpu.matmul %3, %5, %cst {dimension_numbers = #tpu.dot_dimension_numbers<[1], [0], [0], [1], [0, 0, 1, 1], [], []>} : vector<256x64xbf16>, vector<64x128xbf16>, vector<256x128xf32> -> vector<256x128xf32>
    %7 = arith.addf %4, %6 : vector<256x128xf32>
    %c0_6 = arith.constant 0 : index
    %c0_7 = arith.constant 0 : index
    %8 = vector.load %arg14[%c0_6, %c0_7] : memref<256x128xf32, #tpu.memory_space<vmem>>, vector<256x128xf32>
    tpu.vector_store %arg14[%c0_6, %c0_7], %7 {strides = array<i32>} : memref<256x128xf32, #tpu.memory_space<vmem>>, vector<256x128xf32>,
    %c0_i32_8 = arith.constant 0 : i32
    %9 = arith.cmpi eq, %arg1, %c0_i32_8 : i32
    %10 = arith.extui %9 : i1 to i32
    %c0_i32_9 = arith.constant 0 : i32
    %11 = arith.cmpi ne, %10, %c0_i32_9 : i32
    scf.if %11 {
      %c0_10 = arith.constant 0 : index
      %c0_11 = arith.constant 0 : index
      %12 = vector.load %arg14[%c0_10, %c0_11] : memref<256x128xf32, #tpu.memory_space<vmem>>, vector<256x128xf32>
      %c0_12 = arith.constant 0 : index
      %c0_13 = arith.constant 0 : index
      %13 = vector.load %arg4[%c0_12, %c0_13] : memref<1x128xf32, #tpu.memory_space<vmem>>, vector<1x128xf32>
      %14 = vector.broadcast %13 : vector<1x128xf32> to vector<256x128xf32>
      %15 = arith.addf %12, %14 : vector<256x128xf32>
      %cst_14 = arith.constant dense<0.000000e+00> : vector<256xf32>
      %16 = vector.multi_reduction <add>, %15, %cst_14 [1] : vector<256x128xf32> to vector<256xf32>
      %17 = vector.shape_cast %16 : vector<256xf32> to vector<256x1xf32>
      %18 = arith.mulf %15, %15 : vector<256x128xf32>
      %cst_15 = arith.constant dense<0.000000e+00> : vector<256xf32>
      %19 = vector.multi_reduction <add>, %18, %cst_15 [1] : vector<256x128xf32> to vector<256xf32>
      %20 = vector.shape_cast %19 : vector<256xf32> to vector<256x1xf32>
      %cst_16 = arith.constant 3.125000e-02 : f32
      %21 = vector.broadcast %cst_16 : f32 to vector<256x1xf32>
      %22 = arith.mulf %17, %21 : vector<256x1xf32>
      %cst_17 = arith.constant 3.125000e-02 : f32
      %23 = vector.broadcast %cst_17 : f32 to vector<256x1xf32>
      %24 = arith.mulf %20, %23 : vector<256x1xf32>
      %25 = arith.mulf %22, %22 : vector<256x1xf32>
      %26 = arith.subf %24, %25 : vector<256x1xf32>
      %cst_18 = arith.constant 0.000000e+00 : f32
      %27 = vector.broadcast %cst_18 : f32 to vector<256x1xf32>
      %28 = arith.maximumf %26, %27 : vector<256x1xf32>
      %29 = vector.broadcast %22 : vector<256x1xf32> to vector<256x128xf32>
      %30 = arith.subf %15, %29 : vector<256x128xf32>
      %cst_19 = arith.constant 9.99999974E-6 : f32
      %31 = vector.broadcast %cst_19 : f32 to vector<256x1xf32>
      %32 = arith.addf %28, %31 : vector<256x1xf32>
      %33 = math.rsqrt %32 : vector<256x1xf32>
      %34 = vector.broadcast %33 : vector<256x1xf32> to vector<256x128xf32>
      %35 = arith.mulf %30, %34 : vector<256x128xf32>
      %c0_20 = arith.constant 0 : index
      %c0_21 = arith.constant 0 : index
      %36 = vector.load %arg5[%c0_20, %c0_21] : memref<1x128xf32, #tpu.memory_space<vmem>>, vector<1x128xf32>
      %37 = vector.broadcast %36 : vector<1x128xf32> to vector<256x128xf32>
      %38 = arith.mulf %35, %37 : vector<256x128xf32>
      %c0_22 = arith.constant 0 : index
      %c0_23 = arith.constant 0 : index
      %39 = vector.load %arg6[%c0_22, %c0_23] : memref<1x128xf32, #tpu.memory_space<vmem>>, vector<1x128xf32>
      %40 = vector.broadcast %39 : vector<1x128xf32> to vector<256x128xf32>
      %41 = arith.addf %38, %40 : vector<256x128xf32>
      %42 = math.tanh %41 : vector<256x128xf32>
      %43 = arith.truncf %42 : vector<256x128xf32> to vector<256x128xbf16>
      %c0_24 = arith.constant 0 : index
      %c0_25 = arith.constant 0 : index
      %44 = vector.load %arg7[%c0_24, %c0_25] : memref<128x128xbf16, #tpu.memory_space<vmem>>, vector<128x128xbf16>
      %cst_26 = arith.constant dense<0.000000e+00> : vector<256x128xf32>
      %45 = tpu.matmul %43, %44, %cst_26 {dimension_numbers = #tpu.dot_dimension_numbers<[1], [0], [0], [1], [0, 0, 1, 1], [], []>} : vector<256x128xbf16>, vector<128x128xbf16>, vector<256x128xf32> -> vector<256x128xf32>
      %c0_27 = arith.constant 0 : index
      %c0_28 = arith.constant 0 : index
      %46 = vector.load %arg8[%c0_27, %c0_28] : memref<1x128xf32, #tpu.memory_space<vmem>>, vector<1x128xf32>
      %47 = vector.broadcast %46 : vector<1x128xf32> to vector<256x128xf32>
      %48 = arith.addf %45, %47 : vector<256x128xf32>
      %cst_29 = arith.constant 0.000000e+00 : f32
      %49 = vector.broadcast %cst_29 : f32 to vector<256x128xf32>
      %50 = arith.maximumf %48, %49 : vector<256x128xf32>
      %51 = arith.truncf %50 : vector<256x128xf32> to vector<256x128xbf16>
      %c0_30 = arith.constant 0 : index
      %c0_31 = arith.constant 0 : index
      %52 = vector.load %arg9[%c0_30, %c0_31] : memref<128x128xbf16, #tpu.memory_space<vmem>>, vector<128x128xbf16>
      %cst_32 = arith.constant dense<0.000000e+00> : vector<256x128xf32>
      %53 = tpu.matmul %51, %52, %cst_32 {dimension_numbers = #tpu.dot_dimension_numbers<[1], [0], [0], [1], [0, 0, 1, 1], [], []>} : vector<256x128xbf16>, vector<128x128xbf16>, vector<256x128xf32> -> vector<256x128xf32>
      %c0_33 = arith.constant 0 : index
      %c0_34 = arith.constant 0 : index
      %54 = vector.load %arg10[%c0_33, %c0_34] : memref<1x128xf32, #tpu.memory_space<vmem>>, vector<1x128xf32>
      %55 = vector.broadcast %54 : vector<1x128xf32> to vector<256x128xf32>
      %56 = arith.addf %53, %55 : vector<256x128xf32>
      %cst_35 = arith.constant 0.000000e+00 : f32
      %57 = vector.broadcast %cst_35 : f32 to vector<256x128xf32>
      %58 = arith.maximumf %56, %57 : vector<256x128xf32>
      %c0_36 = arith.constant 0 : index
      %c0_37 = arith.constant 0 : index
      %59 = vector.load %arg11[%c0_36, %c0_37] : memref<1x128xf32, #tpu.memory_space<vmem>>, vector<1x128xf32>
      %60 = vector.broadcast %59 : vector<1x128xf32> to vector<256x128xf32>
      %61 = arith.mulf %58, %60 : vector<256x128xf32>
      %cst_38 = arith.constant dense<0.000000e+00> : vector<256xf32>
      %62 = vector.multi_reduction <add>, %61, %cst_38 [1] : vector<256x128xf32> to vector<256xf32>
      %63 = vector.shape_cast %62 : vector<256xf32> to vector<256x1xf32>
      %c0_39 = arith.constant 0 : index
      %c0_40 = arith.constant 0 : index
      %64 = vector.load %arg12[%c0_39, %c0_40] : memref<1x1xf32, #tpu.memory_space<vmem>>, vector<1x1xf32>
      %65 = vector.broadcast %64 : vector<1x1xf32> to vector<256x1xf32>
      %66 = arith.addf %63, %65 : vector<256x1xf32>
      %c0_41 = arith.constant 0 : index
      %c0_42 = arith.constant 0 : index
      %67 = vector.load %arg13[%c0_41, %c0_42] : memref<256x1xf32, #tpu.memory_space<vmem>>, vector<256x1xf32>
      tpu.vector_store %arg13[%c0_41, %c0_42], %66 {strides = array<i32>} : memref<256x1xf32, #tpu.memory_space<vmem>>, vector<256x1xf32>,
    } else {
    }
    return
  }
  func.func @transform_0(%arg0: i32, %arg1: i32) -> (i32, i32) {
    %c0_i32 = arith.constant 0 : i32
    return %arg0, %arg1 : i32, i32
  }
  func.func @transform_1(%arg0: i32, %arg1: i32) -> (i32, i32) {
    %c0_i32 = arith.constant 0 : i32
    %c0_i32_0 = arith.constant 0 : i32
    return %arg1, %c0_i32 : i32, i32
  }
  func.func @transform_2(%arg0: i32, %arg1: i32) -> (i32, i32) {
    %c0_i32 = arith.constant 0 : i32
    %c0_i32_0 = arith.constant 0 : i32
    %c0_i32_1 = arith.constant 0 : i32
    return %c0_i32, %c0_i32_0 : i32, i32
  }
  func.func @transform_3(%arg0: i32, %arg1: i32) -> (i32, i32) {
    %c0_i32 = arith.constant 0 : i32
    %c0_i32_0 = arith.constant 0 : i32
    %c0_i32_1 = arith.constant 0 : i32
    return %c0_i32, %c0_i32_0 : i32, i32
  }
  func.func @transform_4(%arg0: i32, %arg1: i32) -> (i32, i32) {
    %c0_i32 = arith.constant 0 : i32
    %c0_i32_0 = arith.constant 0 : i32
    %c0_i32_1 = arith.constant 0 : i32
    return %c0_i32, %c0_i32_0 : i32, i32
  }
  func.func @transform_5(%arg0: i32, %arg1: i32) -> (i32, i32) {
    %c0_i32 = arith.constant 0 : i32
    %c0_i32_0 = arith.constant 0 : i32
    %c0_i32_1 = arith.constant 0 : i32
    return %c0_i32, %c0_i32_0 : i32, i32
  }
  func.func @transform_6(%arg0: i32, %arg1: i32) -> (i32, i32) {
    %c0_i32 = arith.constant 0 : i32
    %c0_i32_0 = arith.constant 0 : i32
    %c0_i32_1 = arith.constant 0 : i32
    return %c0_i32, %c0_i32_0 : i32, i32
  }
  func.func @transform_7(%arg0: i32, %arg1: i32) -> (i32, i32) {
    %c0_i32 = arith.constant 0 : i32
    %c0_i32_0 = arith.constant 0 : i32
    %c0_i32_1 = arith.constant 0 : i32
    return %c0_i32, %c0_i32_0 : i32, i32
  }
  func.func @transform_8(%arg0: i32, %arg1: i32) -> (i32, i32) {
    %c0_i32 = arith.constant 0 : i32
    %c0_i32_0 = arith.constant 0 : i32
    %c0_i32_1 = arith.constant 0 : i32
    return %c0_i32, %c0_i32_0 : i32, i32
  }
  func.func @transform_9(%arg0: i32, %arg1: i32) -> (i32, i32) {
    %c0_i32 = arith.constant 0 : i32
    %c0_i32_0 = arith.constant 0 : i32
    %c0_i32_1 = arith.constant 0 : i32
    return %c0_i32, %c0_i32_0 : i32, i32
  }
  func.func @transform_10(%arg0: i32, %arg1: i32) -> (i32, i32) {
    %c0_i32 = arith.constant 0 : i32
    %c0_i32_0 = arith.constant 0 : i32
    %c0_i32_1 = arith.constant 0 : i32
    return %c0_i32, %c0_i32_0 : i32, i32
  }
  func.func @transform_11(%arg0: i32, %arg1: i32) -> (i32, i32) {
    %c0_i32 = arith.constant 0 : i32
    %c0_i32_0 = arith.constant 0 : i32
    return %arg0, %c0_i32 : i32, i32
  }
}

</mosaic_0001>

<bundles_post_ra>
// kernel: tpu_custom_call.1
= control target key start
LH: loop header
LB: loop body
LE: loop exit
PB: predicated region body
PF: predicated region fallthrough
CT: control target
= control target key end

     0   :  { %vm253_vm0 = vcmask 523264   ;;  %s3552_s1 = inlined_call_operand.vmem [shape: bf16[64,128], index: 1, kind: input, shape index: {}]   ;;  %s3553_s2 = inlined_call_operand.vmem [shape: f32[1,128], index: 2, kind: input, shape index: {}]   ;;  %s3554_s0 = inlined_call_operand.vmem [shape: bf16[256,64], index: 0, kind: input, shape index: {}]   ;;  %s3555_s3 = inlined_call_operand.vmem [shape: f32[1,128], index: 3, kind: input, shape index: {}]   ;;  %s3556_s4 = inlined_call_operand.vmem [shape: f32[1,128], index: 4, kind: input, shape index: {}]   ;;  %s3557_s5 = inlined_call_operand.vmem [shape: bf16[128,128], index: 5, kind: input, shape index: {}]   ;;  %s3558_s6 = inlined_call_operand.vmem [shape: f32[1,128], index: 6, kind: input, shape index: {}]   ;;  %s3559_s7 = inlined_call_operand.vmem [shape: bf16[128,128], index: 7, kind: input, shape index: {}]   ;;  %s3560_s8 = inlined_call_operand.vmem [shape: f32[1,128], index: 8, kind: input, shape index: {}]   ;;  %s3561_s9 = inlined_call_operand.vmem [shape: f32[1,128], index: 9, kind: input, shape index: {}]   ;;  %s3562_s10 = inlined_call_operand.<no memory space> [shape: f32[1,1], index: 10, kind: input, shape index: {}]   ;;  %s3563_s11 = inlined_call_operand.vmem [shape: f32[256,1], index: 11, kind: output, shape index: {}]  }
   0x1   :  { %v2128_v0 = vld [vmem:[%s3552_s1 + $0x18] sm:$0xff]  ;;  %v2127_v1 = vld [vmem:[%s3552_s1 + $0x10] sm:$0xff]  ;;  %v2126_v2 = vld [vmem:[%s3552_s1 + $0x8] sm:$0xff] }
   0x2   :  { %306 = vmatpush.bf16.msra.mxu0 %v2128_v0  ;;  %2145 = vmatpush.bf16.msra.mxu3 %v2128_v0  ;;  %v2125_v3 = vld [vmem:[%s3552_s1] sm:$0xff]  ;;  %v2110_v5 = vld [vmem:[%s3554_s0 + $0x8] sm:$0xff]  ;;  %v2111_v6 = vld [vmem:[%s3554_s0 + $0x10] sm:$0xff] }
   0x3   :  { %v2109_v4 = vld [vmem:[%s3554_s0] sm:$0xff]  ;;  %v2122_v7 = vld [vmem:[%s3554_s0 + $0x68] sm:$0xff]  ;;  %v2112_v8 = vld [vmem:[%s3554_s0 + $0x18] sm:$0xff] }
   0x4   :  { %v2113_v9 = vld [vmem:[%s3554_s0 + $0x20] sm:$0xff]  ;;  %v2114_v10 = vld [vmem:[%s3554_s0 + $0x28] sm:$0xff]  ;;  %v2115_v11 = vld [vmem:[%s3554_s0 + $0x30] sm:$0xff] }
   0x5   :  { %v2116_v12 = vld [vmem:[%s3554_s0 + $0x38] sm:$0xff]  ;;  %v2415_v13 = vld [vmem:[%s3553_s2] ss:$0 sm:$0xff]  ;;  %v2118_v21 = vld [vmem:[%s3554_s0 + $0x48] sm:$0xff] }
   0x6   :  { %307 = vmatpush.bf16.msra.mxu0 %v2127_v1  ;;  %2146 = vmatpush.bf16.msra.mxu3 %v2127_v1  ;;  %v2117_v14 = vld [vmem:[%s3554_s0 + $0x40] sm:$0xff]  ;;  %v2119_v28 = vld [vmem:[%s3554_s0 + $0x50] sm:$0xff]  ;;  %v2120_v36 = vld [vmem:[%s3554_s0 + $0x58] sm:$0xff] }
   0x7   :  { %v2123_v35 = vld [vmem:[%s3554_s0 + $0x70] sm:$0xff]  ;;  %v2124_v43 = vld [vmem:[%s3554_s0 + $0x78] sm:$0xff]  ;;  %v2121_v44 = vld [vmem:[%s3554_s0 + $0x60] sm:$0xff] }
   0xa   :  { %308 = vmatpush.bf16.msra.mxu0 %v2126_v2  ;;  %2147 = vmatpush.bf16.msra.mxu3 %v2126_v2 }
   0xe   :  { %309 = vmatpush.bf16.msra.mxu0 %v2125_v3  ;;  %2148 = vmatpush.bf16.msra.mxu3 %v2125_v3  ;;  %v2136_v3 = vld [vmem:[%s3557_s5 + $0x38] sm:$0xff] }
   0xf   :  { %1450 = vmatpush.bf16.msra.mxu1 %v2136_v3 }
  0x11   :  { %2029 = vmatmul.msk.bf16.vlgmr.msra.gmra.mxu0 %vm253_vm0, %v2109_v4  ;;  %2042 = vmatmul.msk.bf16.vlgmr.msra.gmra.mxu3 %vm253_vm0, %v2122_v7 }
  0x12   :  { %2149 = vmatpush.bf16.msrb.mxu3 %v2136_v3 }
  0x21   :  { %2030 = vmatmul.msk.bf16.gmra.mxu0 %vm253_vm0, %v2110_v5  ;;  %2043 = vmatmul.msk.bf16.gmra.mxu3 %vm253_vm0, %v2123_v35  ;;  %v2135_v5 = vld [vmem:[%s3557_s5 + $0x30] sm:$0xff] }
  0x22   :  { %1451 = vmatpush.bf16.msra.mxu1 %v2135_v5  ;;  %2150 = vmatpush.bf16.msrb.mxu3 %v2135_v5 }
  0x31   :  { %2031 = vmatmul.msk.bf16.gmra.mxu0 %vm253_vm0, %v2111_v6  ;;  %2044 = vmatmul.msk.bf16.gmra.mxu3 %vm253_vm0, %v2124_v43 }
  0x41   :  { %2032 = vmatmul.msk.bf16.gmra.mxu0 %vm253_vm0, %v2112_v8 }
  0x51   :  { %2033 = vmatmul.msk.bf16.gmra.mxu0 %vm253_vm0, %v2113_v9  ;;  %v2134_v9 = vld [vmem:[%s3557_s5 + $0x28] sm:$0xff] }
  0x52   :  { %1452 = vmatpush.bf16.msra.mxu1 %v2134_v9  ;;  %2151 = vmatpush.bf16.msrb.mxu3 %v2134_v9 }
  0x61   :  { %2034 = vmatmul.msk.bf16.gmra.mxu0 %vm253_vm0, %v2114_v10 }
  0x71   :  { %2035 = vmatmul.msk.bf16.gmra.mxu0 %vm253_vm0, %v2115_v11 }
  0x81   :  { %2036 = vmatmul.msk.bf16.gmra.mxu0 %vm253_vm0, %v2116_v12  ;;  %v2133_v12 = vld [vmem:[%s3557_s5 + $0x20] sm:$0xff] }
  0x82   :  { %1453 = vmatpush.bf16.msra.mxu1 %v2133_v12  ;;  %2152 = vmatpush.bf16.msrb.mxu3 %v2133_v12 }
  0x8e   :  { %v311_v15 = vpop.f32.mrf.mxu0 }
  0x8f   :  { %v2421_v16 = vadd.f32 %v2415_v13, %v311_v15 }
  0x91   :  { %2037 = vmatmul.msk.bf16.gmra.mxu0 %vm253_vm0, %v2117_v14  ;;  %526 = vadd.xlane.f32.xlu0 %v2421_v16  ;;  %v590_v17 = vmul.f32 %v2421_v16, %v2421_v16 }
  0x93   :  { %622 = vadd.xlane.f32.xlu1 %v590_v17 }
  0x94   :  { %v376_v47 = vpop.f32.mrf.mxu3 }
  0x95   :  { %v2500_v49 = vadd.f32 %v2415_v13, %v376_v47 }
  0x96   :  { %v313_v18 = vpop.f32.mrf.mxu0 }
  0x97   :  { %v2428_v19 = vadd.f32 %v2415_v13, %v313_v18  ;;  %v616_v52 = vmul.f32 %v2500_v49, %v2500_v49 }
  0x99   :  { %528 = vadd.xlane.f32.xlu0 %v2428_v19  ;;  %v591_v20 = vmul.f32 %v2428_v19, %v2428_v19 }
  0x9b   :  { %624 = vadd.xlane.f32.xlu1 %v591_v20 }
  0x9c   :  { %v378_v54 = vpop.f32.mrf.mxu3 }
  0x9d   :  { %v2511_v55 = vadd.f32 %v2415_v13, %v378_v54 }
  0x9e   :  { %v316_v22 = vpop.f32.mrf.mxu0 }
  0x9f   :  { %v2437_v23 = vadd.f32 %v2415_v13, %v316_v22 }
  0xa1   :  { %2038 = vmatmul.msk.bf16.gmra.mxu0 %vm253_vm0, %v2118_v21  ;;  %530 = vadd.xlane.f32.xlu2 %v2437_v23  ;;  %v592_v24 = vmul.f32 %v2437_v23, %v2437_v23 }
  0xa3   :  { %626 = vadd.xlane.f32.xlu0 %v592_v24  ;;  %v2132_v24 = vld [vmem:[%s3557_s5 + $0x18] sm:$0xff] }
  0xa4   :  { %1454 = vmatpush.bf16.msra.mxu1 %v2132_v24  ;;  %2153 = vmatpush.bf16.msrb.mxu3 %v2132_v24 }
  0xa6   :  { %v318_v25 = vpop.f32.mrf.mxu0 }
  0xa7   :  { %v2444_v26 = vadd.f32 %v2415_v13, %v318_v25 }
  0xa9   :  { %532 = vadd.xlane.f32.xlu2 %v2444_v26  ;;  %v593_v27 = vmul.f32 %v2444_v26, %v2444_v26 }
  0xab   :  { %628 = vadd.xlane.f32.xlu1 %v593_v27 }
  0xae   :  { %v321_v29 = vpop.f32.mrf.mxu0 }
  0xaf   :  { %v2453_v30 = vadd.f32 %v2415_v13, %v321_v29 }
  0xb1   :  { %2039 = vmatmul.msk.bf16.gmra.mxu0 %vm253_vm0, %v2119_v28  ;;  %534 = vadd.xlane.f32.xlu2 %v2453_v30  ;;  %v594_v31 = vmul.f32 %v2453_v30, %v2453_v30 }
  0xb3   :  { %630 = vadd.xlane.f32.xlu1 %v594_v31  ;;  %v2131_v31 = vld [vmem:[%s3557_s5 + $0x10] sm:$0xff] }
  0xb4   :  { %1455 = vmatpush.bf16.msra.mxu1 %v2131_v31  ;;  %2154 = vmatpush.bf16.msrb.mxu3 %v2131_v31 }
  0xb6   :  { %v323_v32 = vpop.f32.mrf.mxu0 }
  0xb7   :  { %v2460_v33 = vadd.f32 %v2415_v13, %v323_v32 }
  0xb9   :  { %536 = vadd.xlane.f32.xlu0 %v2460_v33  ;;  %v595_v34 = vmul.f32 %v2460_v33, %v2460_v33 }
  0xbb   :  { %632 = vadd.xlane.f32.xlu2 %v595_v34 }
  0xbe   :  { %v326_v37 = vpop.f32.mrf.mxu0 }
  0xbf   :  { %v2473_v38 = vadd.f32 %v2415_v13, %v326_v37 }
  0xc1   :  { %2040 = vmatmul.msk.bf16.gmra.mxu0 %vm253_vm0, %v2120_v36  ;;  %538 = vadd.xlane.f32.xlu0 %v2473_v38  ;;  %v596_v39 = vmul.f32 %v2473_v38, %v2473_v38 }
  0xc3   :  { %634 = vadd.xlane.f32.xlu2 %v596_v39  ;;  %v2130_v39 = vld [vmem:[%s3557_s5 + $0x8] sm:$0xff] }
  0xc4   :  { %1456 = vmatpush.bf16.msra.mxu1 %v2130_v39  ;;  %2155 = vmatpush.bf16.msrb.mxu3 %v2130_v39 }
  0xc6   :  { %v328_v40 = vpop.f32.mrf.mxu0 }
  0xc7   :  { %v2480_v41 = vadd.f32 %v2415_v13, %v328_v40 }
  0xc9   :  { %540 = vadd.xlane.f32.xlu1 %v2480_v41  ;;  %v597_v42 = vmul.f32 %v2480_v41, %v2480_v41 }
  0xcb   :  { %636 = vadd.xlane.f32.xlu0 %v597_v42 }
  0xce   :  { %v331_v45 = vpop.f32.mrf.mxu0 }
  0xcf   :  { %v2493_v46 = vadd.f32 %v2415_v13, %v331_v45 }
  0xd1   :  { %2041 = vmatmul.msk.bf16.gmra.mxu0 %vm253_vm0, %v2121_v44  ;;  %542 = vadd.xlane.f32.xlu1 %v2493_v46  ;;  %v598_v48 = vmul.f32 %v2493_v46, %v2493_v46 }
  0xd3   :  { %638 = vadd.xlane.f32.xlu0 %v598_v48  ;;  %v2129_v48 = vld [vmem:[%s3557_s5] sm:$0xff] }
  0xd4   :  { %1457 = vmatpush.bf16.msra.mxu1 %v2129_v48  ;;  %2156 = vmatpush.bf16.msrb.mxu3 %v2129_v48 }
  0xd6   :  { %v333_v50 = vpop.f32.mrf.mxu0 }
  0xd7   :  { %v2503_v51 = vadd.f32 %v2415_v13, %v333_v50 }
  0xd9   :  { %544 = vadd.xlane.f32.xlu2 %v2503_v51  ;;  %v599_v53 = vmul.f32 %v2503_v51, %v2503_v51 }
  0xdb   :  { %640 = vadd.xlane.f32.xlu1 %v599_v53  ;;  %674 = vadd.xlane.f32.xlu0 %v616_v52 }
  0xde   :  { %v336_v56 = vpop.f32.mrf.mxu0 }
  0xdf   :  { %v2516_v57 = vadd.f32 %v2415_v13, %v336_v56 }
  0xe1   :  { %580 = vadd.xlane.f32.xlu2 %v2511_v55  ;;  %v600_v60 = vmul.f32 %v2516_v57, %v2516_v57 }
  0xe3   :  { %578 = vadd.xlane.f32.xlu1 %v2500_v49 }
  0xe6   :  { %v338_v58 = vpop.f32.mrf.mxu0 }
  0xe7   :  { %v2519_v59 = vadd.f32 %v2415_v13, %v338_v58 }
  0xe9   :  { %546 = vadd.xlane.f32.xlu2 %v2516_v57  ;;  %548 = vadd.xlane.f32.xlu0 %v2519_v59  ;;  %v601_v63 = vmul.f32 %v2519_v59, %v2519_v59 }
  0xeb   :  { %642 = vadd.xlane.f32.xlu1 %v600_v60 }
  0xee   :  { %v341_v61 = vpop.f32.mrf.mxu0 }
  0xef   :  { %v2526_v62 = vadd.f32 %v2415_v13, %v341_v61 }
  0xf1   :  { %644 = vadd.xlane.f32.xlu2 %v601_v63  ;;  %550 = vadd.xlane.f32.xlu0 %v2526_v62  ;;  %v602_v2 = vmul.f32 %v2526_v62, %v2526_v62 }
  0xf6   :  { %v343_v0 = vpop.f32.mrf.mxu0 }
  0xf7   :  { %v2532_v1 = vadd.f32 %v2415_v13, %v343_v0 }
  0xf9   :  { %646 = vadd.xlane.f32.xlu2 %v602_v2  ;;  %552 = vadd.xlane.f32.xlu1 %v2532_v1  ;;  %v603_v4 = vmul.f32 %v2532_v1, %v2532_v1 }
  0xfb   :  { %648 = vadd.xlane.f32.xlu0 %v603_v4 }
  0xfe   :  { %v346_v6 = vpop.f32.mrf.mxu0 }
  0xff   :  { %v2546_v7 = vadd.f32 %v2415_v13, %v346_v6 }
 0x101   :  { %554 = vadd.xlane.f32.xlu1 %v2546_v7  ;;  %v604_v8 = vmul.f32 %v2546_v7, %v2546_v7 }
 0x103   :  { %650 = vadd.xlane.f32.xlu0 %v604_v8 }
 0x104   :  { %v527_v10 = vpop.xlane.xlu0 %526 }
 0x105   :  { %v2554_v11 = vmul.f32 0.03125, %v527_v10 }
 0x106   :  { %v623_v14 = vpop.xlane.xlu1 %622  ;;  %v348_v15 = vpop.f32.mrf.mxu0 }
 0x107   :  { %v750_v17 = vmul.f32 %v2554_v11, %v2554_v11  ;;  %v718_v18 = vmul.f32 0.03125, %v623_v14  ;;  %v2562_v20 = vadd.f32 %v2415_v13, %v348_v15 }
 0x109   :  { %v782_v21 = vsub.f32 %v718_v18, %v750_v17  ;;  %556 = vadd.xlane.f32.xlu2 %v2562_v20  ;;  %v605_v22 = vmul.f32 %v2562_v20, %v2562_v20 }
 0x10b   :  { %v814_v25 = vmax.f32 %v782_v21, 0.0  ;;  %652 = vadd.xlane.f32.xlu1 %v605_v22 }
 0x10c   :  { %v529_v27 = vpop.xlane.xlu0 %528 }
 0x10d   :  { %v878_v28 = vadd.f32 1e-05, %v814_v25  ;;  %v2570_v29 = vmul.f32 0.03125, %v529_v27  ;;  %v846_v27 = vsub.f32 %v2421_v16, %v2554_v11 }
 0x10e   :  { %v625_v32 = vpop.xlane.xlu1 %624  ;;  %v351_v34 = vpop.f32.mrf.mxu0 }
 0x10f   :  { %2172 = vrsqrt.f32 %v878_v28  ;;  %v751_v35 = vmul.f32 %v2570_v29, %v2570_v29  ;;  %v719_v36 = vmul.f32 0.03125, %v625_v32  ;;  %v2578_v37 = vadd.f32 %v2415_v13, %v351_v34 }
 0x110   :  { %vm916_vm2 = vweird.f32 %v878_v28  ;;  %v847_v48 = vsub.f32 %v2428_v19, %v2570_v29 }
 0x111   :  { %v783_v40 = vsub.f32 %v719_v36, %v751_v35  ;;  %558 = vadd.xlane.f32.xlu0 %v2578_v37  ;;  %v606_v42 = vmul.f32 %v2578_v37, %v2578_v37 }
 0x113   :  { %v815_v43 = vmax.f32 %v783_v40, 0.0  ;;  %654 = vadd.xlane.f32.xlu2 %v606_v42 }
 0x114   :  { %v531_v44 = vpop.xlane.xlu2 %530 }
 0x115   :  { %v2173_v45 = vpop.eup %2172  ;;  %v2586_v47 = vmul.f32 0.03125, %v531_v44  ;;  %v879_v52 = vadd.f32 1e-05, %v815_v43  ;;  %v2620_v44 = vld [vmem:[%s3555_s3] ss:$0 sm:$0xff] }
 0x116   :  { %v911_v50 = vmul.f32 %v2173_v45, %v878_v28  ;;  %v627_v53 = vpop.xlane.xlu0 %626  ;;  %v353_v54 = vpop.f32.mrf.mxu0  ;;  %vm917_vm1 = vweird.f32 %v2173_v45 }
 0x117   :  { %v752_v56 = vmul.f32 %v2586_v47, %v2586_v47  ;;  %v720_v58 = vmul.f32 0.03125, %v627_v53  ;;  %v2594_v60 = vadd.f32 %v2415_v13, %v353_v54  ;;  %2174 = vrsqrt.f32 %v879_v52  ;;  %vm918_vm3 = vmor %vm916_vm2, %vm917_vm1 }
 0x118   :  { %v912_v61 = vmul.f32 %v2173_v45, %v911_v50  ;;  %vm926_vm5 = vweird.f32 %v879_v52 }
 0x119   :  { %v784_v63 = vsub.f32 %v720_v58, %v752_v56  ;;  %560 = vadd.xlane.f32.xlu1 %v2594_v60  ;;  %v607_v0 = vmul.f32 %v2594_v60, %v2594_v60 }
 0x11a   :  { %v913_v2 = vmul.f32 0.5, %v912_v61 }
 0x11b   :  { %v816_v3 = vmax.f32 %v784_v63, 0.0  ;;  %656 = vadd.xlane.f32.xlu0 %v607_v0 }
 0x11c   :  { %v914_v4 = vsub.f32 1.5, %v913_v2  ;;  %v533_v5 = vpop.xlane.xlu2 %532 }
 0x11d   :  { %v2599_v6 = vadd.f32 1e-05, %v816_v3  ;;  %v2601_v8 = vmul.f32 0.03125, %v533_v5  ;;  %v2175_v9 = vpop.eup %2174 }
 0x11e   :  { %v629_v10 = vpop.xlane.xlu1 %628  ;;  %v2603_v12 = vpop.f32.mrf.mxu0  ;;  %v915_v14 = vmul.f32 %v2173_v45, %v914_v4  ;;  %v921_v15 = vmul.f32 %v2175_v9, %v879_v52  ;;  %vm927_vm4 = vweird.f32 %v2175_v9  ;;  %v2631_v52 = vld [vmem:[%s3556_s4] ss:$0 sm:$0xff] }
 0x11f   :  { %2176 = vrsqrt.f32 %v2599_v6  ;;  %v753_v17 = vmul.f32 %v2601_v8, %v2601_v8  ;;  %v721_v18 = vmul.f32 0.03125, %v629_v10  ;;  %vm928_vm6 = vmor %vm926_vm5, %vm927_vm4  ;;  %vm936_vm8 = vweird.f32 %v2599_v6 }
 0x120   :  { %v922_v21 = vmul.f32 %v2175_v9, %v921_v15  ;;  %v919_v24 = vsel %vm918_vm3, %v2173_v45, %v915_v14 }
 0x121   :  { %v785_v22 = vsub.f32 %v721_v18, %v753_v17  ;;  %v1230_v39 = vmul.f32 %v919_v24, %v846_v27 }
 0x122   :  { %v923_v25 = vmul.f32 0.5, %v922_v21 }
 0x123   :  { %v817_v31 = vmax.f32 %v785_v22, 0.0  ;;  %v1266_v61 = vmul.f32 %v2620_v44, %v1230_v39 }
 0x124   :  { %v535_v32 = vpop.xlane.xlu2 %534  ;;  %v924_v35 = vsub.f32 1.5, %v923_v25 }
 0x125   :  { %v2177_v34 = vpop.eup %2176  ;;  %v2610_v36 = vmul.f32 0.03125, %v535_v32  ;;  %v2613_v42 = vadd.f32 1e-05, %v817_v31  ;;  %v1302_v10 = vadd.f32 %v2631_v52, %v1266_v61  ;;  %v848_v31 = vsub.f32 %v2437_v23, %v2586_v47 }
 0x126   :  { %v931_v40 = vmul.f32 %v2177_v34, %v2599_v6  ;;  %v631_v28 = vpop.xlane.xlu1 %630  ;;  %v2615_v43 = vpop.f32.mrf.mxu0  ;;  %v925_v16 = vmul.f32 %v2175_v9, %v924_v35  ;;  %vm937_vm7 = vweird.f32 %v2177_v34 }
 0x127   :  { %v754_v11 = vmul.f32 %v2610_v36, %v2610_v36  ;;  %v722_v45 = vmul.f32 0.03125, %v631_v28  ;;  %2178 = vrsqrt.f32 %v2613_v42  ;;  %vm938_vm9 = vmor %vm936_vm8, %vm937_vm7  ;;  %vm946_vm11 = vweird.f32 %v2613_v42 }
 0x128   :  { %v932_v50 = vmul.f32 %v2177_v34, %v931_v40  ;;  %v929_v53 = vsel %vm928_vm6, %v2175_v9, %v925_v16 }
 0x129   :  { %v786_v54 = vsub.f32 %v722_v45, %v754_v11  ;;  %v1231_v56 = vmul.f32 %v929_v53, %v847_v48 }
 0x12a   :  { %v933_v58 = vmul.f32 0.5, %v932_v50 }
 0x12b   :  { %v818_v63 = vmax.f32 %v786_v54, 0.0  ;;  %v1267_v19 = vmul.f32 %v2620_v44, %v1231_v56  ;;  %v849_v54 = vsub.f32 %v2444_v26, %v2601_v8 }
 0x12c   :  { %v934_v0 = vsub.f32 1.5, %v933_v58  ;;  %v537_v2 = vpop.xlane.xlu0 %536 }
 0x12d   :  { %v2634_v29 = vadd.f32 1e-05, %v818_v63  ;;  %v2636_v3 = vmul.f32 0.03125, %v537_v2  ;;  %v2179_v4 = vpop.eup %2178  ;;  %v1303_v14 = vadd.f32 %v2631_v52, %v1267_v19 }
 0x12e   :  { %v633_v5 = vpop.xlane.xlu2 %632  ;;  %v2638_v9 = vpop.f32.mrf.mxu0  ;;  %v935_v15 = vmul.f32 %v2177_v34, %v934_v0  ;;  %v941_v17 = vmul.f32 %v2179_v4, %v2613_v42  ;;  %vm947_vm10 = vweird.f32 %v2179_v4 }
 0x12f   :  { %2180 = vrsqrt.f32 %v2634_v29  ;;  %v755_v18 = vmul.f32 %v2636_v3, %v2636_v3  ;;  %v723_v21 = vmul.f32 0.03125, %v633_v5  ;;  %vm948_vm12 = vmor %vm946_vm11, %vm947_vm10  ;;  %vm956_vm14 = vweird.f32 %v2634_v29 }
 0x130   :  { %v942_v22 = vmul.f32 %v2179_v4, %v941_v17  ;;  %2182 = vtanh.f32 %v1303_v14  ;;  %v939_v25 = vsel %vm938_vm9, %v2177_v34, %v935_v15 }
 0x131   :  { %v787_v24 = vsub.f32 %v723_v21, %v755_v18  ;;  %2184 = vtanh.f32 %v1302_v10  ;;  %v1232_v16 = vmul.f32 %v939_v25, %v848_v31 }
 0x132   :  { %v943_v27 = vmul.f32 0.5, %v942_v22 }
 0x133   :  { %v819_v32 = vmax.f32 %v787_v24, 0.0  ;;  %v1268_v19 = vmul.f32 %v2620_v44, %v1232_v16 }
 0x134   :  { %v539_v35 = vpop.xlane.xlu0 %538  ;;  %v944_v40 = vsub.f32 1.5, %v943_v27 }
 0x135   :  { %v2181_v39 = vpop.eup %2180  ;;  %v2649_v28 = vmul.f32 0.03125, %v539_v35  ;;  %v2652_v11 = vadd.f32 1e-05, %v819_v32  ;;  %v1304_v21 = vadd.f32 %v2631_v52, %v1268_v19 }
 0x136   :  { %v951_v6 = vmul.f32 %v2181_v39, %v2634_v29  ;;  %v635_v45 = vpop.xlane.xlu2 %634  ;;  %v2654_v48 = vpop.f32.mrf.mxu0  ;;  %v945_v50 = vmul.f32 %v2179_v4, %v944_v40  ;;  %vm957_vm13 = vweird.f32 %v2181_v39  ;;  %v850_v40 = vsub.f32 %v2453_v30, %v2610_v36 }
 0x137   :  { %v2183_v34 = vpop.eup %2182  ;;  %v756_v23 = vmul.f32 %v2649_v28, %v2649_v28  ;;  %v724_v47 = vmul.f32 0.03125, %v635_v45  ;;  %2186 = vrsqrt.f32 %v2652_v11  ;;  %vm958_vm15 = vmor %vm956_vm14, %vm957_vm13  ;;  %vm966_vm1 = vweird.f32 %v2652_v11 }
 0x138   :  { %v2185_v53 = vpop.eup %2184  ;;  %v952_v56 = vmul.f32 %v2181_v39, %v951_v6  ;;  %v949_v58 = vsel %vm948_vm12, %v2179_v4, %v945_v50 }
 0x139   :  { %v788_v61 = vsub.f32 %v724_v47, %v756_v23  ;;  %v1366_v63 = vpack.c.bf16 %v2183_v34, %v2185_v53  ;;  %v1233_v0 = vmul.f32 %v949_v58, %v849_v54 }
 0x13a   :  { %v953_v2 = vmul.f32 0.5, %v952_v56 }
 0x13b   :  { %v820_v42 = vmax.f32 %v788_v61, 0.0  ;;  %1458 = vmatmul.bf16.vlgmr.msra.gmra.mxu1 %v1366_v63  ;;  %v1269_v14 = vmul.f32 %v2620_v44, %v1233_v0  ;;  %v851_v63 = vsub.f32 %v2460_v33, %v2636_v3 }
 0x13c   :  { %v954_v5 = vsub.f32 1.5, %v953_v2  ;;  %v541_v10 = vpop.xlane.xlu1 %540 }
 0x13d   :  { %v2664_v15 = vadd.f32 1e-05, %v820_v42  ;;  %v2666_v26 = vmul.f32 0.03125, %v541_v10  ;;  %v2187_v8 = vpop.eup %2186  ;;  %v1305_v22 = vadd.f32 %v2631_v52, %v1269_v14 }
 0x13e   :  { %v955_v17 = vmul.f32 %v2181_v39, %v954_v5  ;;  %v637_v4 = vpop.xlane.xlu0 %636  ;;  %v2668_v18 = vpop.f32.mrf.mxu0  ;;  %v961_v24 = vmul.f32 %v2187_v8, %v2652_v11  ;;  %vm967_vm0 = vweird.f32 %v2187_v8 }
 0x13f   :  { %2188 = vrsqrt.f32 %v2664_v15  ;;  %v757_v25 = vmul.f32 %v2666_v26, %v2666_v26  ;;  %v725_v27 = vmul.f32 0.03125, %v637_v4  ;;  %vm968_vm2 = vmor %vm966_vm1, %vm967_vm0  ;;  %vm976_vm4 = vweird.f32 %v2664_v15 }
 0x140   :  { %v962_v31 = vmul.f32 %v2187_v8, %v961_v24  ;;  %2190 = vtanh.f32 %v1305_v22  ;;  %v959_v32 = vsel %vm958_vm15, %v2181_v39, %v955_v17 }
 0x141   :  { %v789_v35 = vsub.f32 %v725_v27, %v757_v25  ;;  %2192 = vtanh.f32 %v1304_v21  ;;  %v1234_v50 = vmul.f32 %v959_v32, %v850_v40 }
 0x142   :  { %v963_v16 = vmul.f32 0.5, %v962_v31 }
 0x143   :  { %v821_v6 = vmax.f32 %v789_v35, 0.0  ;;  %v1270_v5 = vmul.f32 %v2620_v44, %v1234_v50  ;;  %v852_v50 = vsub.f32 %v2473_v38, %v2649_v28  ;;  %v853_v38 = vsub.f32 %v2480_v41, %v2666_v26 }
 0x144   :  { %v543_v45 = vpop.xlane.xlu1 %542  ;;  %v964_v23 = vsub.f32 1.5, %v963_v16 }
 0x145   :  { %v2189_v34 = vpop.eup %2188  ;;  %v2679_v29 = vmul.f32 0.03125, %v543_v45  ;;  %v2682_v53 = vadd.f32 1e-05, %v821_v6  ;;  %v1306_v3 = vadd.f32 %v2631_v52, %v1270_v5 }
 0x146   :  { %v971_v47 = vmul.f32 %v2189_v34, %v2664_v15  ;;  %v639_v54 = vpop.xlane.xlu0 %638  ;;  %v2684_v39 = vpop.f32.mrf.mxu0  ;;  %v965_v58 = vmul.f32 %v2187_v8, %v964_v23  ;;  %vm977_vm3 = vweird.f32 %v2189_v34 }
 0x147   :  { %v2191_v56 = vpop.eup %2190  ;;  %v758_v30 = vmul.f32 %v2679_v29, %v2679_v29  ;;  %v726_v36 = vmul.f32 0.03125, %v639_v54  ;;  %2194 = vrsqrt.f32 %v2682_v53  ;;  %vm978_vm5 = vmor %vm976_vm4, %vm977_vm3  ;;  %vm986_vm7 = vweird.f32 %v2682_v53 }
 0x148   :  { %v2193_v61 = vpop.eup %2192  ;;  %v972_v0 = vmul.f32 %v2189_v34, %v971_v47  ;;  %v969_v2 = vsel %vm968_vm2, %v2187_v8, %v965_v58 }
 0x149   :  { %v790_v19 = vsub.f32 %v726_v36, %v758_v30  ;;  %v1367_v42 = vpack.c.bf16 %v2191_v56, %v2193_v61  ;;  %v1235_v10 = vmul.f32 %v969_v2, %v851_v63 }
 0x14a   :  { %v973_v14 = vmul.f32 0.5, %v972_v0 }
 0x14b   :  { %v822_v11 = vmax.f32 %v790_v19, 0.0  ;;  %1463 = vmatmul.bf16.gmra.mxu1 %v1367_v42  ;;  %v1271_v21 = vmul.f32 %v2620_v44, %v1235_v10 }
 0x14c   :  { %v974_v17 = vsub.f32 1.5, %v973_v14  ;;  %v545_v4 = vpop.xlane.xlu2 %544 }
 0x14d   :  { %v2694_v22 = vadd.f32 1e-05, %v822_v11  ;;  %v2696_v33 = vmul.f32 0.03125, %v545_v4  ;;  %v2195_v8 = vpop.eup %2194  ;;  %v1307_v31 = vadd.f32 %v2631_v52, %v1271_v21 }
 0x14e   :  { %v975_v24 = vmul.f32 %v2189_v34, %v974_v17  ;;  %v641_v25 = vpop.xlane.xlu1 %640  ;;  %v371_v27 = vpop.f32.mrf.mxu0  ;;  %v981_v32 = vmul.f32 %v2195_v8, %v2682_v53  ;;  %vm987_vm6 = vweird.f32 %v2195_v8 }
 0x14f   :  { %2196 = vrsqrt.f32 %v2694_v22  ;;  %v759_v35 = vmul.f32 %v2696_v33, %v2696_v33  ;;  %v727_v40 = vmul.f32 0.03125, %v641_v25  ;;  %v2706_v45 = vadd.f32 %v2415_v13, %v371_v27  ;;  %v675_v15 = vpop.xlane.xlu0 %674  ;;  %vm988_vm8 = vmor %vm986_vm7, %vm987_vm6 }
 0x150   :  { %v979_v16 = vsel %vm978_vm5, %v2189_v34, %v975_v24  ;;  %v982_v6 = vmul.f32 %v2195_v8, %v981_v32  ;;  %2198 = vtanh.f32 %v1306_v3  ;;  %v744_v42 = vmul.f32 0.03125, %v675_v15 }
 0x151   :  { %v791_v23 = vsub.f32 %v727_v40, %v759_v35  ;;  %2200 = vtanh.f32 %v1307_v31  ;;  %574 = vadd.xlane.f32.xlu2 %v2706_v45  ;;  %v614_v54 = vmul.f32 %v2706_v45, %v2706_v45  ;;  %v1236_v56 = vmul.f32 %v979_v16, %v852_v50 }
 0x152   :  { %v983_v47 = vmul.f32 0.5, %v982_v6  ;;  %v617_v25 = vmul.f32 %v2511_v55, %v2511_v55  ;;  %vm996_vm10 = vweird.f32 %v2694_v22 }
 0x153   :  { %v823_v58 = vmax.f32 %v791_v23, 0.0  ;;  %670 = vadd.xlane.f32.xlu1 %v614_v54  ;;  %v1272_v26 = vmul.f32 %v2620_v44, %v1236_v56  ;;  %v381_v23 = vpop.f32.mrf.mxu3 }
 0x154   :  { %v2713_v34 = vpop.xlane.xlu2 %580  ;;  %v984_v36 = vsub.f32 1.5, %v983_v47  ;;  %v2743_v47 = vadd.f32 %v2415_v13, %v2603_v12  ;;  %v854_v12 = vsub.f32 %v2493_v46, %v2679_v29 }
 0x155   :  { %v2197_v30 = vpop.eup %2196  ;;  %v2718_v61 = vadd.f32 1e-05, %v823_v58  ;;  %v1308_v35 = vadd.f32 %v2631_v52, %v1272_v26  ;;  %v2767_v26 = vadd.f32 %v2415_v13, %v381_v23 }
 0x156   :  { %v991_v28 = vmul.f32 %v2197_v30, %v2694_v22  ;;  %v579_v63 = vpop.xlane.xlu1 %578  ;;  %v373_v0 = vpop.f32.mrf.mxu0  ;;  %v985_v19 = vmul.f32 %v2195_v8, %v984_v36  ;;  %vm997_vm9 = vweird.f32 %v2197_v30  ;;  %v2751_v36 = vadd.f32 %v2415_v13, %v2615_v43 }
 0x157   :  { %v2199_v2 = vpop.eup %2198  ;;  %v2721_v5 = vmul.f32 0.03125, %v579_v63  ;;  %2202 = vrsqrt.f32 %v2718_v61  ;;  %v2725_v41 = vadd.f32 %v2415_v13, %v373_v0  ;;  %vm998_vm11 = vmor %vm996_vm10, %vm997_vm9  ;;  %vm1006_vm13 = vweird.f32 %v2718_v61 }
 0x158   :  { %v2201_v10 = vpop.eup %2200  ;;  %v992_v14 = vmul.f32 %v2197_v30, %v991_v28  ;;  %v989_v11 = vsel %vm988_vm8, %v2195_v8, %v985_v19  ;;  %2204 = vtanh.f32 %v1308_v35 }
 0x159   :  { %v776_v17 = vmul.f32 %v2721_v5, %v2721_v5  ;;  %v1368_v4 = vpack.c.bf16 %v2201_v10, %v2199_v2  ;;  %v1237_v21 = vmul.f32 %v989_v11, %v853_v38  ;;  %576 = vadd.xlane.f32.xlu0 %v2725_v41  ;;  %v615_v3 = vmul.f32 %v2725_v41, %v2725_v41 }
 0x15a   :  { %v993_v53 = vmul.f32 0.5, %v992_v14 }
 0x15b   :  { %v808_v24 = vsub.f32 %v744_v42, %v776_v17  ;;  %1468 = vmatmul.bf16.gmra.mxu1 %v1368_v4  ;;  %672 = vadd.xlane.f32.xlu2 %v615_v3  ;;  %v1273_v32 = vmul.f32 %v2620_v44, %v1237_v21 }
 0x15c   :  { %v994_v27 = vsub.f32 1.5, %v993_v53  ;;  %v547_v8 = vpop.xlane.xlu2 %546  ;;  %v549_v31 = vpop.xlane.xlu0 %548  ;;  %676 = vadd.xlane.f32.xlu1 %v617_v25  ;;  %v855_v25 = vsub.f32 %v2503_v51, %v2696_v33  ;;  %v609_v51 = vmul.f32 %v2751_v36, %v2751_v36 }
 0x15d   :  { %v840_v40 = vmax.f32 %v808_v24, 0.0  ;;  %v2737_v16 = vmul.f32 0.03125, %v547_v8  ;;  %v2203_v6 = vpop.eup %2202  ;;  %v1309_v15 = vadd.f32 %v2631_v52, %v1273_v32  ;;  %v2758_v63 = vmul.f32 0.03125, %v549_v31  ;;  %v383_v31 = vpop.f32.mrf.mxu3 }
 0x15e   :  { %v995_v50 = vmul.f32 %v2197_v30, %v994_v27  ;;  %v1001_v54 = vmul.f32 %v2203_v6, %v2718_v61  ;;  %v643_v58 = vpop.xlane.xlu1 %642  ;;  %vm1007_vm12 = vweird.f32 %v2203_v6  ;;  %v2205_v14 = vpop.eup %2204 }
 0x15f   :  { %v2747_v56 = vadd.f32 1e-05, %v840_v40  ;;  %v760_v22 = vmul.f32 %v2737_v16, %v2737_v16  ;;  %v728_v0 = vmul.f32 0.03125, %v643_v58  ;;  %v761_v46 = vmul.f32 %v2758_v63, %v2758_v63  ;;  %vm1008_vm14 = vmor %vm1006_vm13, %vm1007_vm12 }
 0x160   :  { %v999_v38 = vsel %vm998_vm11, %v2197_v30, %v995_v50  ;;  %v1002_v28 = vmul.f32 %v2203_v6, %v1001_v54  ;;  %v608_v30 = vmul.f32 %v2743_v47, %v2743_v47 }
 0x161   :  { %2206 = vrsqrt.f32 %v2747_v56  ;;  %564 = vadd.xlane.f32.xlu0 %v2751_v36  ;;  %v1238_v2 = vmul.f32 %v999_v38, %v854_v12  ;;  %v792_v19 = vsub.f32 %v728_v0, %v760_v22  ;;  %vm1176_vm15 = vweird.f32 %v2747_v56 }
 0x162   :  { %2208 = vtanh.f32 %v1309_v15  ;;  %v1003_v43 = vmul.f32 0.5, %v1002_v28  ;;  %v2786_v15 = vadd.f32 %v2415_v13, %v383_v31 }
 0x163   :  { %562 = vadd.xlane.f32.xlu2 %v2743_v47  ;;  %v824_v11 = vmax.f32 %v792_v19, 0.0  ;;  %v1274_v3 = vmul.f32 %v2620_v44, %v1238_v2 }
 0x164   :  { %v645_v42 = vpop.xlane.xlu2 %644  ;;  %v1004_v10 = vsub.f32 1.5, %v1003_v43  ;;  %658 = vadd.xlane.f32.xlu1 %v608_v30  ;;  %v551_v17 = vpop.xlane.xlu0 %550 }
 0x165   :  { %v729_v29 = vmul.f32 0.03125, %v645_v42  ;;  %v2775_v8 = vadd.f32 1e-05, %v824_v11  ;;  %v2777_v40 = vmul.f32 0.03125, %v551_v17  ;;  %v872_v11 = vsub.f32 %v2500_v49, %v2721_v5 }
 0x166   :  { %v1005_v21 = vmul.f32 %v2203_v6, %v1004_v10 }
 0x167   :  { %v2207_v4 = vpop.eup %2206  ;;  %v793_v53 = vsub.f32 %v729_v29, %v761_v46  ;;  %2210 = vrsqrt.f32 %v2775_v8  ;;  %v762_v12 = vmul.f32 %v2777_v40, %v2777_v40  ;;  %vm1016_vm3 = vweird.f32 %v2775_v8 }
 0x168   :  { %v2209_v24 = vpop.eup %2208  ;;  %v1171_v27 = vmul.f32 %v2207_v4, %v2747_v56  ;;  %v1009_v32 = vsel %vm1008_vm14, %v2203_v6, %v1005_v21  ;;  %v1310_v6 = vadd.f32 %v2631_v52, %v1274_v3  ;;  %vm1177_vm0 = vweird.f32 %v2207_v4 }
 0x169   :  { %v825_v35 = vmax.f32 %v793_v53, 0.0  ;;  %v1369_v50 = vpack.c.bf16 %v2209_v24, %v2205_v14  ;;  %v1239_v61 = vmul.f32 %v1009_v32, %v855_v25  ;;  %582 = vadd.xlane.f32.xlu0 %v2767_v26  ;;  %vm2798_vm1 = vmor %vm1176_vm15, %vm1177_vm0  ;;  %v619_v14 = vmul.f32 %v2786_v15, %v2786_v15 }
 0x16a   :  { %v1172_v23 = vmul.f32 %v2207_v4, %v1171_v27  ;;  %v2811_v3 = vadd.f32 %v2415_v13, %v2638_v9  ;;  %v618_v25 = vmul.f32 %v2767_v26, %v2767_v26 }
 0x16b   :  { %v2783_v33 = vadd.f32 1e-05, %v825_v35  ;;  %1473 = vmatmul.bf16.gmra.mxu1 %v1369_v50  ;;  %660 = vadd.xlane.f32.xlu2 %v609_v51  ;;  %v1275_v22 = vmul.f32 %v2620_v44, %v1239_v61  ;;  %v386_v35 = vpop.f32.mrf.mxu3  ;;  %v2826_v51 = vadd.f32 %v2415_v13, %v2654_v48 }
 0x16c   :  { %v1173_v54 = vmul.f32 0.5, %v1172_v23  ;;  %v647_v58 = vpop.xlane.xlu2 %646  ;;  %v553_v38 = vpop.xlane.xlu1 %552  ;;  %584 = vadd.xlane.f32.xlu1 %v2786_v15  ;;  %v610_v13 = vmul.f32 %v2811_v3, %v2811_v3 }
 0x16d   :  { %2212 = vrsqrt.f32 %v2783_v33  ;;  %v730_v28 = vmul.f32 0.03125, %v647_v58  ;;  %v2795_v0 = vmul.f32 0.03125, %v553_v38  ;;  %v1311_v56 = vadd.f32 %v2631_v52, %v1275_v22  ;;  %v2211_v46 = vpop.eup %2210 }
 0x16e   :  { %v1174_v2 = vsub.f32 1.5, %v1173_v54  ;;  %v649_v43 = vpop.xlane.xlu0 %648  ;;  %2214 = vtanh.f32 %v1310_v6  ;;  %v1011_v17 = vmul.f32 %v2211_v46, %v2775_v8  ;;  %vm1017_vm2 = vweird.f32 %v2211_v46 }
 0x16f   :  { %v794_v19 = vsub.f32 %v730_v28, %v762_v12  ;;  %v763_v42 = vmul.f32 %v2795_v0, %v2795_v0  ;;  %v731_v10 = vmul.f32 0.03125, %v649_v43  ;;  %2216 = vtanh.f32 %v1311_v56  ;;  %vm1018_vm4 = vmor %vm1016_vm3, %vm1017_vm2 }
 0x170   :  { %v1175_v29 = vmul.f32 %v2207_v4, %v1174_v2  ;;  %v1012_v32 = vmul.f32 %v2211_v46, %v1011_v17  ;;  %v856_v56 = vsub.f32 %v2516_v57, %v2737_v16  ;;  %vm1026_vm6 = vweird.f32 %v2783_v33 }
 0x171   :  { %v826_v21 = vmax.f32 %v794_v19, 0.0  ;;  %v795_v53 = vsub.f32 %v731_v10, %v763_v42  ;;  %680 = vadd.xlane.f32.xlu0 %v619_v14  ;;  %v857_v16 = vsub.f32 %v2519_v59, %v2758_v63  ;;  %v2300_v59 = vld [vmem:[%s3553_s2] ss:$0 sm:$0xff] }
 0x172   :  { %v1179_v24 = vsel %vm2798_vm1, %v2207_v4, %v1175_v29  ;;  %v1013_v23 = vmul.f32 0.5, %v1012_v32  ;;  %v611_v29 = vmul.f32 %v2826_v51, %v2826_v51  ;;  %v2858_v63 = vadd.f32 %v2300_v59, %v386_v35 }
 0x173   :  { %v2213_v27 = vpop.eup %2212  ;;  %v2817_v31 = vmul.f32 %v1179_v24, %v872_v11  ;;  %v2819_v49 = vadd.f32 1e-05, %v826_v21  ;;  %v827_v5 = vmax.f32 %v795_v53, 0.0  ;;  %678 = vadd.xlane.f32.xlu2 %v618_v25 }
 0x174   :  { %v1021_v50 = vmul.f32 %v2213_v27, %v2783_v33  ;;  %v555_v9 = vpop.xlane.xlu1 %554  ;;  %v2215_v61 = vpop.eup %2214  ;;  %566 = vadd.xlane.f32.xlu1 %v2811_v3  ;;  %v1014_v22 = vsub.f32 1.5, %v1013_v23  ;;  %vm1027_vm5 = vweird.f32 %v2213_v27 }
 0x175   :  { %2218 = vrsqrt.f32 %v2819_v49  ;;  %v2217_v4 = vpop.eup %2216  ;;  %v2828_v54 = vadd.f32 1e-05, %v827_v5  ;;  %v2830_v58 = vmul.f32 0.03125, %v555_v9  ;;  %vm1028_vm7 = vmor %vm1026_vm6, %vm1027_vm5  ;;  %vm1036_vm9 = vweird.f32 %v2819_v49 }
 0x176   :  { %v1022_v6 = vmul.f32 %v2213_v27, %v1021_v50  ;;  %v651_v38 = vpop.xlane.xlu0 %650  ;;  %v1370_v28 = vpack.c.bf16 %v2217_v4, %v2215_v61  ;;  %v1015_v48 = vmul.f32 %v2211_v46, %v1014_v22 }
 0x177   :  { %v732_v12 = vmul.f32 0.03125, %v651_v38  ;;  %2220 = vrsqrt.f32 %v2828_v54  ;;  %v764_v43 = vmul.f32 %v2830_v58, %v2830_v58  ;;  %vm1046_vm12 = vweird.f32 %v2828_v54 }
 0x178   :  { %v1023_v2 = vmul.f32 0.5, %v1022_v6  ;;  %v1019_v10 = vsel %vm1018_vm4, %v2211_v46, %v1015_v48  ;;  %v388_v46 = vpop.f32.mrf.mxu3 }
 0x179   :  { %v796_v19 = vsub.f32 %v732_v12, %v764_v43  ;;  %662 = vadd.xlane.f32.xlu0 %v610_v13  ;;  %v1240_v14 = vmul.f32 %v1019_v10, %v856_v56  ;;  %v2862_v23 = vadd.f32 %v2300_v59, %v388_v46 }
 0x17a   :  { %v1024_v30 = vsub.f32 1.5, %v1023_v2  ;;  %v620_v2 = vmul.f32 %v2858_v63, %v2858_v63 }
 0x17b   :  { %v2840_v42 = vpop.eup %2218  ;;  %1478 = vmatmul.bf16.gmra.mxu1 %v1370_v28  ;;  %568 = vadd.xlane.f32.xlu2 %v2826_v51  ;;  %v828_v17 = vmax.f32 %v796_v19, 0.0  ;;  %v1276_v32 = vmul.f32 %v2620_v44, %v1240_v14 }
 0x17c   :  { %v1025_v11 = vmul.f32 %v2213_v27, %v1024_v30  ;;  %v1031_v8 = vmul.f32 %v2840_v42, %v2819_v49  ;;  %v557_v57 = vpop.xlane.xlu2 %556  ;;  %664 = vadd.xlane.f32.xlu1 %v611_v29  ;;  %vm1037_vm8 = vweird.f32 %v2840_v42 }
 0x17d   :  { %v2850_v21 = vmul.f32 0.03125, %v557_v57  ;;  %v2221_v53 = vpop.eup %2220  ;;  %v2860_v9 = vadd.f32 1e-05, %v828_v17  ;;  %v1312_v35 = vadd.f32 %v2631_v52, %v1276_v32  ;;  %vm2877_vm10 = vmor %vm1036_vm9, %vm1037_vm8  ;;  %v859_v17 = vsub.f32 %v2532_v1, %v2795_v0 }
 0x17e   :  { %v1029_v24 = vsel %vm1028_vm7, %v2213_v27, %v1025_v11  ;;  %v1032_v25 = vmul.f32 %v2840_v42, %v1031_v8  ;;  %v653_v33 = vpop.xlane.xlu1 %652  ;;  %v1041_v50 = vmul.f32 %v2221_v53, %v2828_v54  ;;  %vm1047_vm11 = vweird.f32 %v2221_v53 }
 0x17f   :  { %v1241_v5 = vmul.f32 %v1029_v24, %v857_v16  ;;  %v765_v27 = vmul.f32 %v2850_v21, %v2850_v21  ;;  %v733_v4 = vmul.f32 0.03125, %v653_v33  ;;  %2222 = vrsqrt.f32 %v2860_v9  ;;  %vm1048_vm13 = vmor %vm1046_vm12, %vm1047_vm11  ;;  %v2143_v33 = vld [vmem:[%s3559_s7 + $0x30] sm:$0xff] }
 0x180   :  { %v1033_v61 = vmul.f32 0.5, %v1032_v25  ;;  %v1042_v6 = vmul.f32 %v2221_v53, %v1041_v50  ;;  %2224 = vtanh.f32 %v1312_v35  ;;  %v858_v11 = vsub.f32 %v2526_v62, %v2777_v40  ;;  %v2144_v62 = vld [vmem:[%s3559_s7 + $0x38] sm:$0xff] }
 0x181   :  { %v1277_v38 = vmul.f32 %v2620_v44, %v1241_v5  ;;  %v797_v12 = vsub.f32 %v733_v4, %v765_v27  ;;  %588 = vadd.xlane.f32.xlu0 %v2862_v23  ;;  %v2894_v16 = vadd.f32 %v2300_v59, %v2668_v18  ;;  %v621_v0 = vmul.f32 %v2862_v23, %v2862_v23 }
 0x182   :  { %v1034_v22 = vsub.f32 1.5, %v1033_v61  ;;  %v1043_v28 = vmul.f32 0.5, %v1042_v6  ;;  %1655 = vmatpush.bf16.msra.mxu2 %v2144_v62  ;;  %2157 = vmatpush.bf16.msra.mxu3 %v2144_v62  ;;  %vm1056_vm15 = vweird.f32 %v2860_v9 }
 0x183   :  { %v1313_v43 = vadd.f32 %v2631_v52, %v1277_v38  ;;  %v829_v48 = vmax.f32 %v797_v12, 0.0  ;;  %586 = vadd.xlane.f32.xlu2 %v2858_v63 }
 0x184   :  { %v1035_v13 = vmul.f32 %v2840_v42, %v1034_v22  ;;  %v1044_v30 = vsub.f32 1.5, %v1043_v28  ;;  %682 = vadd.xlane.f32.xlu1 %v620_v2  ;;  %v559_v19 = vpop.xlane.xlu0 %558 }
 0x185   :  { %2226 = vtanh.f32 %v1313_v43  ;;  %v2884_v29 = vadd.f32 1e-05, %v829_v48  ;;  %v2886_v49 = vmul.f32 0.03125, %v559_v19  ;;  %v2888_v14 = vpop.eup %2222 }
 0x186   :  { %v1039_v10 = vsel %vm2877_vm10, %v2840_v42, %v1035_v13  ;;  %v1045_v8 = vmul.f32 %v2221_v53, %v1044_v30  ;;  %v655_v57 = vpop.xlane.xlu2 %654  ;;  %v1051_v42 = vmul.f32 %v2888_v14, %v2860_v9  ;;  %v2225_v24 = vpop.eup %2224  ;;  %1656 = vmatpush.bf16.msra.mxu2 %v2143_v33  ;;  %2158 = vmatpush.bf16.msra.mxu3 %v2143_v33  ;;  %vm1057_vm14 = vweird.f32 %v2888_v14 }
 0x187   :  { %2228 = vrsqrt.f32 %v2884_v29  ;;  %v1242_v40 = vmul.f32 %v1039_v10, %v858_v11  ;;  %v766_v18 = vmul.f32 %v2886_v49, %v2886_v49  ;;  %v734_v46 = vmul.f32 0.03125, %v655_v57  ;;  %v2141_v57 = vld [vmem:[%s3559_s7 + $0x20] sm:$0xff]  ;;  %vm2943_vm0 = vmor %vm1056_vm15, %vm1057_vm14 }
 0x188   :  { %v1049_v54 = vsel %vm1048_vm13, %v2221_v53, %v1045_v8  ;;  %v1052_v1 = vmul.f32 %v2888_v14, %v1051_v42  ;;  %v2915_v53 = vadd.f32 %v2300_v59, %v2684_v39  ;;  %v2142_v59 = vld [vmem:[%s3559_s7 + $0x28] sm:$0xff]  ;;  %v612_v8 = vmul.f32 %v2894_v16, %v2894_v16 }
 0x189   :  { %v1243_v25 = vmul.f32 %v1049_v54, %v859_v17  ;;  %570 = vadd.xlane.f32.xlu0 %v2894_v16  ;;  %v798_v5 = vsub.f32 %v734_v46, %v766_v18  ;;  %v1278_v22 = vmul.f32 %v2620_v44, %v1242_v40  ;;  %vm1066_vm2 = vweird.f32 %v2884_v29 }
 0x18a   :  { %v1053_v50 = vmul.f32 0.5, %v1052_v1  ;;  %v613_v56 = vmul.f32 %v2915_v53, %v2915_v53  ;;  %1657 = vmatpush.bf16.msra.mxu2 %v2142_v59  ;;  %2159 = vmatpush.bf16.msra.mxu3 %v2142_v59 }
 0x18b   :  { %v2227_v32 = vpop.eup %2226  ;;  %684 = vadd.xlane.f32.xlu2 %v621_v0  ;;  %v1279_v4 = vmul.f32 %v2620_v44, %v1243_v25  ;;  %v830_v6 = vmax.f32 %v798_v5, 0.0  ;;  %v1314_v19 = vadd.f32 %v2631_v52, %v1278_v22  ;;  %v861_v25 = vsub.f32 %v2562_v20, %v2850_v21 }
 0x18c   :  { %v561_v61 = vpop.xlane.xlu1 %560  ;;  %v1371_v27 = vpack.c.bf16 %v2227_v32, %v2225_v24  ;;  %572 = vadd.xlane.f32.xlu1 %v2915_v53  ;;  %v1054_v35 = vsub.f32 1.5, %v1053_v50  ;;  %v860_v24 = vsub.f32 %v2546_v7, %v2830_v58 }
 0x18d   :  { %v2919_v38 = vmul.f32 0.03125, %v561_v61  ;;  %v2229_v12 = vpop.eup %2228  ;;  %v2926_v2 = vadd.f32 1e-05, %v830_v6  ;;  %v1315_v13 = vadd.f32 %v2631_v52, %v1279_v4 }
 0x18e   :  { %1483 = vmatmul.bf16.gmra.mxu1 %v1371_v27  ;;  %v657_v39 = vpop.xlane.xlu0 %656  ;;  %v1061_v28 = vmul.f32 %v2229_v12, %v2884_v29  ;;  %v1055_v10 = vmul.f32 %v2888_v14, %v1054_v35  ;;  %vm1067_vm1 = vweird.f32 %v2229_v12  ;;  %1658 = vmatpush.bf16.msra.mxu2 %v2141_v57  ;;  %v2139_v29 = vld [vmem:[%s3559_s7 + $0x10] sm:$0xff] }
 0x18f   :  { %v767_v43 = vmul.f32 %v2919_v38, %v2919_v38  ;;  %v735_v48 = vmul.f32 0.03125, %v657_v39  ;;  %2230 = vrsqrt.f32 %v2926_v2  ;;  %2160 = vmatpush.bf16.msra.mxu3 %v2141_v57  ;;  %vm1068_vm3 = vmor %vm1066_vm2, %vm1067_vm1  ;;  %vm1076_vm5 = vweird.f32 %v2926_v2 }
 0x190   :  { %v1062_v30 = vmul.f32 %v2229_v12, %v1061_v28  ;;  %2232 = vtanh.f32 %v1315_v13  ;;  %v1059_v54 = vsel %vm2943_vm0, %v2888_v14, %v1055_v10  ;;  %v2140_v14 = vld [vmem:[%s3559_s7 + $0x18] sm:$0xff] }
 0x191   :  { %v799_v11 = vsub.f32 %v735_v48, %v767_v43  ;;  %668 = vadd.xlane.f32.xlu0 %v613_v56  ;;  %2234 = vtanh.f32 %v1314_v19  ;;  %v1244_v33 = vmul.f32 %v1059_v54, %v860_v24  ;;  %v2137_v43 = vld [vmem:[%s3559_s7] sm:$0xff]  ;;  %v862_v56 = vsub.f32 %v2578_v37, %v2886_v49 }
 0x192   :  { %v1063_v17 = vmul.f32 0.5, %v1062_v30  ;;  %1659 = vmatpush.bf16.msra.mxu2 %v2140_v14  ;;  %v863_v19 = vsub.f32 %v2594_v60, %v2919_v38  ;;  %v2984_v54 = vld [vmem:[%s3558_s6] ss:$0 sm:$0xff] }
 0x193   :  { %v831_v42 = vmax.f32 %v799_v11, 0.0  ;;  %666 = vadd.xlane.f32.xlu2 %v612_v8  ;;  %2161 = vmatpush.bf16.msra.mxu3 %v2140_v14  ;;  %v1280_v61 = vmul.f32 %v2620_v44, %v1244_v33 }
 0x194   :  { %v1064_v40 = vsub.f32 1.5, %v1063_v17 }
 0x195   :  { %v895_v18 = vadd.f32 1e-05, %v831_v42  ;;  %v2231_v46 = vpop.eup %2230  ;;  %v1316_v39 = vadd.f32 %v2631_v52, %v1280_v61 }
 0x196   :  { %v1065_v9 = vmul.f32 %v2229_v12, %v1064_v40  ;;  %v1071_v1 = vmul.f32 %v2231_v46, %v2926_v2  ;;  %v2233_v0 = vpop.eup %2232  ;;  %1660 = vmatpush.bf16.msra.mxu2 %v2139_v29  ;;  %vm1077_vm4 = vweird.f32 %v2231_v46 }
 0x197   :  { %2236 = vrsqrt.f32 %v895_v18  ;;  %v2235_v58 = vpop.eup %2234  ;;  %2162 = vmatpush.bf16.msra.mxu3 %v2139_v29  ;;  %vm1078_vm6 = vmor %vm1076_vm5, %vm1077_vm4  ;;  %vm1086_vm8 = vweird.f32 %v895_v18 }
 0x198   :  { %v1069_v32 = vsel %vm1068_vm3, %v2229_v12, %v1065_v9  ;;  %v1072_v7 = vmul.f32 %v2231_v46, %v1071_v1  ;;  %v1372_v21 = vpack.c.bf16 %v2233_v0, %v2235_v58  ;;  %v2138_v12 = vld [vmem:[%s3559_s7 + $0x8] sm:$0xff] }
 0x199   :  { %v1245_v5 = vmul.f32 %v1069_v32, %v861_v25 }
 0x19a   :  { %v1073_v20 = vmul.f32 0.5, %v1072_v7  ;;  %1661 = vmatpush.bf16.msra.mxu2 %v2138_v12 }
 0x19b   :  { %v1281_v50 = vmul.f32 %v2620_v44, %v1245_v5  ;;  %2163 = vmatpush.bf16.msra.mxu3 %v2138_v12 }
 0x19c   :  { %v1074_v4 = vsub.f32 1.5, %v1073_v20 }
 0x19d   :  { %v2237_v27 = vpop.eup %2236  ;;  %v1317_v22 = vadd.f32 %v2631_v52, %v1281_v50 }
 0x19e   :  { %1488 = vmatmul.bf16.gmra.mxu1 %v1372_v21  ;;  %v1081_v6 = vmul.f32 %v2237_v27, %v895_v18  ;;  %v1075_v59 = vmul.f32 %v2231_v46, %v1074_v4  ;;  %vm1087_vm7 = vweird.f32 %v2237_v27  ;;  %1662 = vmatpush.bf16.msra.mxu2 %v2137_v43  ;;  %v2995_v21 = vmul.f32 0.03125, %v2713_v34 }
 0x19f   :  { %2238 = vtanh.f32 %v1317_v22  ;;  %2164 = vmatpush.bf16.msra.mxu3 %v2137_v43  ;;  %vm1088_vm9 = vmor %vm1086_vm8, %vm1087_vm7 }
 0x1a0   :  { %v1082_v35 = vmul.f32 %v2237_v27, %v1081_v6  ;;  %2240 = vtanh.f32 %v1316_v39  ;;  %v1079_v48 = vsel %vm1078_vm6, %v2231_v46, %v1075_v59 }
 0x1a1   :  { %v1246_v11 = vmul.f32 %v1079_v48, %v862_v56 }
 0x1a2   :  { %v1083_v28 = vmul.f32 0.5, %v1082_v35  ;;  %v777_v35 = vmul.f32 %v2995_v21, %v2995_v21 }
 0x1a3   :  { %v1282_v62 = vmul.f32 %v2620_v44, %v1246_v11 }
 0x1a4   :  { %v1084_v13 = vsub.f32 1.5, %v1083_v28 }
 0x1a5   :  { %v2239_v10 = vpop.eup %2238  ;;  %v1318_v49 = vadd.f32 %v2631_v52, %v1282_v62 }
 0x1a6   :  { %v1085_v30 = vmul.f32 %v2237_v27, %v1084_v13  ;;  %v2241_v57 = vpop.eup %2240 }
 0x1a7   :  { %v1373_v17 = vpack.c.bf16 %v2239_v10, %v2241_v57 }
 0x1a8   :  { %v1089_v8 = vsel %vm1088_vm9, %v2237_v27, %v1085_v30 }
 0x1a9   :  { %v1247_v2 = vmul.f32 %v1089_v8, %v863_v19 }
 0x1ab   :  { %v1283_v42 = vmul.f32 %v2620_v44, %v1247_v2 }
 0x1ad   :  { %v1319_v37 = vadd.f32 %v2631_v52, %v1283_v42 }
 0x1ae   :  { %1493 = vmatmul.bf16.gmra.mxu1 %v1373_v17 }
 0x1af   :  { %2242 = vtanh.f32 %v1319_v37 }
 0x1b0   :  { %2244 = vtanh.f32 %v1318_v49 }
 0x1b5   :  { %v2243_v60 = vpop.eup %2242 }
 0x1b6   :  { %v2245_v38 = vpop.eup %2244 }
 0x1b7   :  { %v1374_v18 = vpack.c.bf16 %v2243_v60, %v2245_v38 }
 0x1b8   :  { %v1459_v40 = vpop.f32.mrf.mxu1 }
 0x1b9   :  { %v1460_v46 = vadd.f32 %v2984_v54, %v1459_v40 }
 0x1bb   :  { %v1539_v9 = vmax.f32 %v1460_v46, 0.0 }
 0x1be   :  { %1498 = vmatmul.bf16.gmra.mxu1 %v1374_v18 }
 0x1c0   :  { %v1461_v44 = vpop.f32.mrf.mxu1 }
 0x1c1   :  { %v1462_v24 = vadd.f32 %v2984_v54, %v1461_v44 }
 0x1c3   :  { %v1540_v25 = vmax.f32 %v1462_v24, 0.0 }
 0x1c4   :  { %v575_v1 = vpop.xlane.xlu2 %574 }
 0x1c5   :  { %v1571_v52 = vpack.c.bf16 %v1540_v25, %v1539_v9  ;;  %v2988_v14 = vmul.f32 0.03125, %v575_v1 }
 0x1c6   :  { %v671_v33 = vpop.xlane.xlu1 %670 }
 0x1c7   :  { %1663 = vmatmul.bf16.vlgmr.msra.gmra.mxu2 %v1571_v52  ;;  %v774_v32 = vmul.f32 %v2988_v14, %v2988_v14  ;;  %v742_v5 = vmul.f32 0.03125, %v671_v33 }
 0x1c8   :  { %v1464_v0 = vpop.f32.mrf.mxu1 }
 0x1c9   :  { %v806_v7 = vsub.f32 %v742_v5, %v774_v32  ;;  %v1465_v50 = vadd.f32 %v2984_v54, %v1464_v0 }
 0x1cb   :  { %v838_v58 = vmax.f32 %v806_v7, 0.0  ;;  %v1541_v34 = vmax.f32 %v1465_v50, 0.0 }
 0x1cc   :  { %v577_v29 = vpop.xlane.xlu0 %576 }
 0x1cd   :  { %v2992_v20 = vmul.f32 0.03125, %v577_v29  ;;  %v902_v61 = vadd.f32 1e-05, %v838_v58 }
 0x1ce   :  { %v673_v27 = vpop.xlane.xlu2 %672 }
 0x1cf   :  { %v775_v4 = vmul.f32 %v2992_v20, %v2992_v20  ;;  %v677_v22 = vpop.xlane.xlu1 %676  ;;  %v743_v12 = vmul.f32 0.03125, %v673_v27  ;;  %2246 = vrsqrt.f32 %v902_v61  ;;  %vm1156_vm11 = vweird.f32 %v902_v61 }
 0x1d0   :  { %v1466_v6 = vpop.f32.mrf.mxu1  ;;  %v745_v59 = vmul.f32 0.03125, %v677_v22 }
 0x1d1   :  { %v1467_v39 = vadd.f32 %v2984_v54, %v1466_v6  ;;  %v807_v28 = vsub.f32 %v743_v12, %v775_v4 }
 0x1d2   :  { %v809_v13 = vsub.f32 %v745_v59, %v777_v35 }
 0x1d3   :  { %v1542_v43 = vmax.f32 %v1467_v39, 0.0  ;;  %v839_v48 = vmax.f32 %v807_v28, 0.0 }
 0x1d4   :  { %v841_v56 = vmax.f32 %v809_v13, 0.0  ;;  %v565_v19 = vpop.xlane.xlu0 %564 }
 0x1d5   :  { %v1572_v30 = vpack.c.bf16 %v1542_v43, %v1541_v34  ;;  %v903_v10 = vadd.f32 1e-05, %v839_v48  ;;  %v3003_v11 = vpop.eup %2246  ;;  %v3014_v38 = vmul.f32 0.03125, %v565_v19 }
 0x1d6   :  { %v3005_v8 = vadd.f32 1e-05, %v841_v56  ;;  %v563_v2 = vpop.xlane.xlu2 %562  ;;  %v1151_v57 = vmul.f32 %v3003_v11, %v902_v61  ;;  %vm1157_vm10 = vweird.f32 %v3003_v11 }
 0x1d7   :  { %1668 = vmatmul.bf16.gmra.mxu2 %v1572_v30  ;;  %2248 = vrsqrt.f32 %v903_v10  ;;  %v659_v42 = vpop.xlane.xlu1 %658  ;;  %v3010_v37 = vmul.f32 0.03125, %v563_v2  ;;  %v769_v58 = vmul.f32 %v3014_v38, %v3014_v38  ;;  %vm3036_vm12 = vmor %vm1156_vm11, %vm1157_vm10  ;;  %v870_v30 = vsub.f32 %v2706_v45, %v2988_v14 }
 0x1d8   :  { %v1469_v17 = vpop.f32.mrf.mxu1  ;;  %2250 = vrsqrt.f32 %v3005_v8  ;;  %v1152_v62 = vmul.f32 %v3003_v11, %v1151_v57  ;;  %v736_v40 = vmul.f32 0.03125, %v659_v42  ;;  %v871_v57 = vsub.f32 %v2725_v41, %v2992_v20 }
 0x1d9   :  { %v768_v60 = vmul.f32 %v3010_v37, %v3010_v37  ;;  %v1470_v52 = vadd.f32 %v2984_v54, %v1469_v17  ;;  %vm1166_vm14 = vweird.f32 %v903_v10  ;;  %vm1186_vm1 = vweird.f32 %v3005_v8 }
 0x1da   :  { %v1153_v49 = vmul.f32 0.5, %v1152_v62 }
 0x1db   :  { %v800_v24 = vsub.f32 %v736_v40, %v768_v60  ;;  %v1543_v12 = vmax.f32 %v1470_v52, 0.0 }
 0x1dc   :  { %v583_v18 = vpop.xlane.xlu0 %582  ;;  %v1154_v44 = vsub.f32 1.5, %v1153_v49 }
 0x1dd   :  { %v2249_v46 = vpop.eup %2248  ;;  %v832_v33 = vmax.f32 %v800_v24, 0.0  ;;  %v3032_v28 = vmul.f32 0.03125, %v583_v18 }
 0x1de   :  { %v3016_v9 = vpop.eup %2250  ;;  %v1161_v25 = vmul.f32 %v2249_v46, %v903_v10  ;;  %v661_v1 = vpop.xlane.xlu2 %660  ;;  %v1155_v50 = vmul.f32 %v3003_v11, %v1154_v44  ;;  %vm1167_vm13 = vweird.f32 %v2249_v46 }
 0x1df   :  { %v1181_v0 = vmul.f32 %v3016_v9, %v3005_v8  ;;  %v585_v5 = vpop.xlane.xlu1 %584  ;;  %v3027_v4 = vadd.f32 1e-05, %v832_v33  ;;  %v737_v39 = vmul.f32 0.03125, %v661_v1  ;;  %vm1168_vm15 = vmor %vm1166_vm14, %vm1167_vm13  ;;  %v778_v45 = vmul.f32 %v3032_v28, %v3032_v28  ;;  %v3061_v1 = vld [vmem:[%s3555_s3] ss:$0 sm:$0xff] }
 0x1e0   :  { %v1471_v32 = vpop.f32.mrf.mxu1  ;;  %v1162_v7 = vmul.f32 %v2249_v46, %v1161_v25  ;;  %v3029_v6 = vmul.f32 0.03125, %v585_v5  ;;  %v1159_v61 = vsel %vm3036_vm12, %v3003_v11, %v1155_v50  ;;  %v873_v33 = vsub.f32 %v2511_v55, %v2995_v21 }
 0x1e1   :  { %v1472_v29 = vadd.f32 %v2984_v54, %v1471_v32  ;;  %v1182_v27 = vmul.f32 %v3016_v9, %v1181_v0  ;;  %2252 = vrsqrt.f32 %v3027_v4  ;;  %v801_v13 = vsub.f32 %v737_v39, %v769_v58 }
 0x1e2   :  { %v1163_v22 = vmul.f32 0.5, %v1162_v7  ;;  %v779_v19 = vmul.f32 %v3029_v6, %v3029_v6  ;;  %v1254_v18 = vmul.f32 %v1159_v61, %v870_v30  ;;  %v1292_v0 = vmul.f32 %v3061_v1, %v2817_v31 }
 0x1e3   :  { %v1544_v35 = vmax.f32 %v1472_v29, 0.0  ;;  %v1183_v59 = vmul.f32 0.5, %v1182_v27  ;;  %v833_v42 = vmax.f32 %v801_v13, 0.0  ;;  %vm1187_vm0 = vweird.f32 %v3016_v9  ;;  %v3084_v27 = vld [vmem:[%s3556_s4] ss:$0 sm:$0xff] }
 0x1e4   :  { %v1164_v43 = vsub.f32 1.5, %v1163_v22  ;;  %v681_v56 = vpop.xlane.xlu0 %680  ;;  %v1290_v21 = vmul.f32 %v3061_v1, %v1254_v18  ;;  %v1328_v8 = vadd.f32 %v3084_v27, %v1292_v0  ;;  %vm3087_vm2 = vmor %vm1186_vm1, %vm1187_vm0  ;;  %vm1096_vm4 = vweird.f32 %v3027_v4 }
 0x1e5   :  { %v1573_v48 = vpack.c.bf16 %v1544_v35, %v1543_v12  ;;  %v747_v2 = vmul.f32 0.03125, %v681_v56  ;;  %v1184_v49 = vsub.f32 1.5, %v1183_v59  ;;  %v3052_v24 = vadd.f32 1e-05, %v833_v42 }
 0x1e6   :  { %v1165_v17 = vmul.f32 %v2249_v46, %v1164_v43  ;;  %v679_v62 = vpop.xlane.xlu2 %678  ;;  %v864_v0 = vsub.f32 %v2743_v47, %v3010_v37  ;;  %v865_v47 = vsub.f32 %v2751_v36, %v3014_v38 }
 0x1e7   :  { %1673 = vmatmul.bf16.gmra.mxu2 %v1573_v48  ;;  %v811_v14 = vsub.f32 %v747_v2, %v779_v19  ;;  %v567_v40 = vpop.xlane.xlu1 %566  ;;  %v746_v60 = vmul.f32 0.03125, %v679_v62  ;;  %v3054_v41 = vpop.eup %2252  ;;  %2254 = vrsqrt.f32 %v3052_v24  ;;  %v1185_v32 = vmul.f32 %v3016_v9, %v1184_v49 }
 0x1e8   :  { %v1474_v11 = vpop.f32.mrf.mxu1  ;;  %v1169_v44 = vsel %vm1168_vm15, %v2249_v46, %v1165_v17  ;;  %v3056_v25 = vmul.f32 0.03125, %v567_v40  ;;  %v1091_v46 = vmul.f32 %v3054_v41, %v3027_v4  ;;  %vm1097_vm3 = vweird.f32 %v3054_v41 }
 0x1e9   :  { %v1255_v20 = vmul.f32 %v1169_v44, %v871_v57  ;;  %v843_v10 = vmax.f32 %v811_v14, 0.0  ;;  %v810_v52 = vsub.f32 %v746_v60, %v778_v45  ;;  %v1475_v35 = vadd.f32 %v2984_v54, %v1474_v11  ;;  %vm3113_vm5 = vmor %vm1096_vm4, %vm1097_vm3 }
 0x1ea   :  { %v1092_v7 = vmul.f32 %v3054_v41, %v1091_v46  ;;  %v770_v50 = vmul.f32 %v3056_v25, %v3056_v25  ;;  %v1189_v34 = vsel %vm3087_vm2, %v3016_v9, %v1185_v32  ;;  %v1326_v17 = vadd.f32 %v3084_v27, %v1290_v21 }
 0x1eb   :  { %v3072_v5 = vadd.f32 1e-05, %v843_v10  ;;  %v842_v58 = vmax.f32 %v810_v52, 0.0  ;;  %v1291_v29 = vmul.f32 %v3061_v1, %v1255_v20  ;;  %v1257_v11 = vmul.f32 %v1189_v34, %v873_v33 }
 0x1ec   :  { %v663_v31 = vpop.xlane.xlu0 %662  ;;  %v1093_v12 = vmul.f32 0.5, %v1092_v7  ;;  %v1545_v60 = vmax.f32 %v1475_v35, 0.0  ;;  %vm1106_vm7 = vweird.f32 %v3052_v24  ;;  %v866_v36 = vsub.f32 %v2811_v3, %v3056_v25 }
 0x1ed   :  { %2256 = vrsqrt.f32 %v3072_v5  ;;  %v738_v55 = vmul.f32 0.03125, %v663_v31  ;;  %v3092_v39 = vadd.f32 1e-05, %v842_v58  ;;  %v2255_v30 = vpop.eup %2254  ;;  %v1327_v2 = vadd.f32 %v3084_v27, %v1291_v29 }
 0x1ee   :  { %v569_v59 = vpop.xlane.xlu2 %568  ;;  %v1094_v61 = vsub.f32 1.5, %v1093_v12  ;;  %v1101_v57 = vmul.f32 %v2255_v30, %v3052_v24  ;;  %vm1107_vm6 = vweird.f32 %v2255_v30  ;;  %v1293_v22 = vmul.f32 %v3061_v1, %v1257_v11 }
 0x1ef   :  { %v802_v43 = vsub.f32 %v738_v55, %v770_v50  ;;  %v665_v48 = vpop.xlane.xlu1 %664  ;;  %v3098_v56 = vmul.f32 0.03125, %v569_v59  ;;  %2258 = vrsqrt.f32 %v3092_v39  ;;  %v874_v12 = vsub.f32 %v2767_v26, %v3032_v28  ;;  %vm1108_vm8 = vmor %vm1106_vm7, %vm1107_vm6 }
 0x1f0   :  { %v1476_v13 = vpop.f32.mrf.mxu1  ;;  %v1095_v42 = vmul.f32 %v3054_v41, %v1094_v61  ;;  %v739_v49 = vmul.f32 0.03125, %v665_v48  ;;  %v1102_v4 = vmul.f32 %v2255_v30, %v1101_v57  ;;  %2260 = vtanh.f32 %v1327_v2 }
 0x1f1   :  { %v1477_v19 = vadd.f32 %v2984_v54, %v1476_v13  ;;  %v834_v9 = vmax.f32 %v802_v43, 0.0  ;;  %v771_v45 = vmul.f32 %v3098_v56, %v3098_v56  ;;  %v875_v43 = vsub.f32 %v2786_v15, %v3029_v6 }
 0x1f2   :  { %v1099_v44 = vsel %vm3113_vm5, %v3054_v41, %v1095_v42  ;;  %v1103_v46 = vmul.f32 0.5, %v1102_v4  ;;  %v3157_v42 = vadd.f32 %v3084_v27, %v1293_v22  ;;  %vm1196_vm10 = vweird.f32 %v3092_v39 }
 0x1f3   :  { %v1546_v62 = vmax.f32 %v1477_v19, 0.0  ;;  %v3109_v14 = vpop.eup %2256  ;;  %v3117_v18 = vadd.f32 1e-05, %v834_v9  ;;  %v803_v10 = vsub.f32 %v739_v49, %v771_v45  ;;  %v1248_v41 = vmul.f32 %v1099_v44, %v864_v0 }
 0x1f4   :  { %v1201_v20 = vmul.f32 %v3109_v14, %v3072_v5  ;;  %v589_v52 = vpop.xlane.xlu0 %588  ;;  %v1104_v31 = vsub.f32 1.5, %v1103_v46  ;;  %vm1207_vm9 = vweird.f32 %v3109_v14  ;;  %vm1206_vm13 = vweird.f32 %v3072_v5 }
 0x1f5   :  { %2262 = vrsqrt.f32 %v3117_v18  ;;  %v3127_v33 = vpop.eup %2258  ;;  %v835_v32 = vmax.f32 %v803_v10, 0.0  ;;  %v1574_v7 = vpack.c.bf16 %v1546_v62, %v1545_v60  ;;  %v3147_v38 = vmul.f32 0.03125, %v589_v52  ;;  %vm3215_vm2 = vmor %vm1206_vm13, %vm1207_vm9 }
 0x1f6   :  { %v587_v58 = vpop.xlane.xlu2 %586  ;;  %2264 = vtanh.f32 %v1326_v17  ;;  %v1202_v29 = vmul.f32 %v3109_v14, %v1201_v20  ;;  %v1191_v50 = vmul.f32 %v3127_v33, %v3092_v39  ;;  %v1105_v35 = vmul.f32 %v2255_v30, %v1104_v31  ;;  %v2261_v34 = vpop.eup %2260 }
 0x1f7   :  { %v683_v21 = vpop.xlane.xlu1 %682  ;;  %v3134_v37 = vadd.f32 1e-05, %v835_v32  ;;  %1678 = vmatmul.bf16.gmra.mxu2 %v1574_v7  ;;  %2266 = vtanh.f32 %v1328_v8  ;;  %v1284_v13 = vmul.f32 %v3061_v1, %v1248_v41  ;;  %v3152_v61 = vmul.f32 0.03125, %v587_v58 }
 0x1f8   :  { %v1479_v55 = vpop.f32.mrf.mxu1  ;;  %v1192_v59 = vmul.f32 %v3127_v33, %v1191_v50  ;;  %v1109_v24 = vsel %vm1108_vm8, %v2255_v30, %v1105_v35  ;;  %v1203_v48 = vmul.f32 0.5, %v1202_v29  ;;  %v748_v49 = vmul.f32 0.03125, %v683_v21 }
 0x1f9   :  { %2268 = vrsqrt.f32 %v3134_v37  ;;  %v1249_v2 = vmul.f32 %v1109_v24, %v865_v47  ;;  %v1480_v62 = vadd.f32 %v2984_v54, %v1479_v55  ;;  %v780_v30 = vmul.f32 %v3152_v61, %v3152_v61 }
 0x1fa   :  { %v1193_v57 = vmul.f32 0.5, %v1192_v59  ;;  %vm1197_vm11 = vweird.f32 %v3127_v33  ;;  %vm1116_vm12 = vweird.f32 %v3117_v18  ;;  %v781_v4 = vmul.f32 %v3147_v38, %v3147_v38 }
 0x1fb   :  { %v3149_v8 = vpop.eup %2262  ;;  %v1320_v44 = vadd.f32 %v3084_v27, %v1284_v13  ;;  %v1204_v20 = vsub.f32 1.5, %v1203_v48  ;;  %v812_v10 = vsub.f32 %v748_v49, %v780_v30  ;;  %v1285_v31 = vmul.f32 %v3061_v1, %v1249_v2  ;;  %vm3205_vm1 = vmor %vm1196_vm10, %vm1197_vm11 }
 0x1fc   :  { %v2265_v19 = vpop.eup %2264  ;;  %v1111_v9 = vmul.f32 %v3149_v8, %v3117_v18  ;;  %v571_v17 = vpop.xlane.xlu0 %570  ;;  %v1194_v7 = vsub.f32 1.5, %v1193_v57  ;;  %v1547_v50 = vmax.f32 %v1480_v62, 0.0  ;;  %vm1117_vm14 = vweird.f32 %v3149_v8 }
 0x1fd   :  { %v1378_v45 = vpack.c.bf16 %v2261_v34, %v2265_v19  ;;  %v3163_v11 = vpop.eup %2266  ;;  %v844_v55 = vmax.f32 %v812_v10, 0.0  ;;  %v3176_v21 = vmul.f32 0.03125, %v571_v17  ;;  %v1205_v59 = vmul.f32 %v3109_v14, %v1204_v20  ;;  %vm3189_vm15 = vmor %vm1116_vm12, %vm1117_vm14 }
 0x1fe   :  { %v1112_v40 = vmul.f32 %v3149_v8, %v1111_v9  ;;  %v685_v60 = vpop.xlane.xlu2 %684  ;;  %v1195_v48 = vmul.f32 %v3127_v33, %v1194_v7  ;;  %v1321_v9 = vadd.f32 %v3084_v27, %v1285_v31  ;;  %vm1126_vm3 = vweird.f32 %v3134_v37 }
 0x1ff   :  { %1518 = vmatmul.bf16.vlgmr.msrb.gmra.mxu3 %v1378_v45  ;;  %v573_v0 = vpop.xlane.xlu1 %572  ;;  %v749_v46 = vmul.f32 0.03125, %v685_v60  ;;  %v2269_v32 = vpop.eup %2268  ;;  %v3182_v13 = vadd.f32 1e-05, %v844_v55  ;;  %v772_v49 = vmul.f32 %v3176_v21, %v3176_v21 }
 0x200   :  { %v1481_v52 = vpop.f32.mrf.mxu1  ;;  %v1113_v58 = vmul.f32 0.5, %v1112_v40  ;;  %v1121_v29 = vmul.f32 %v2269_v32, %v3134_v37  ;;  %v3179_v35 = vmul.f32 0.03125, %v573_v0  ;;  %vm1127_vm0 = vweird.f32 %v2269_v32 }
 0x201   :  { %v1482_v41 = vadd.f32 %v2984_v54, %v1481_v52  ;;  %v813_v24 = vsub.f32 %v749_v46, %v781_v4  ;;  %2270 = vrsqrt.f32 %v3182_v13  ;;  %v1199_v39 = vsel %vm3205_vm1, %v3127_v33, %v1195_v48  ;;  %vm1128_vm4 = vmor %vm1126_vm3, %vm1127_vm0 }
 0x202   :  { %v1114_v47 = vsub.f32 1.5, %v1113_v58  ;;  %v1122_v34 = vmul.f32 %v2269_v32, %v1121_v29  ;;  %v773_v40 = vmul.f32 %v3179_v35, %v3179_v35  ;;  %2272 = vtanh.f32 %v1320_v44 }
 0x203   :  { %v1548_v22 = vmax.f32 %v1482_v41, 0.0  ;;  %v845_v30 = vmax.f32 %v813_v24, 0.0  ;;  %2274 = vtanh.f32 %v1321_v9  ;;  %v1209_v44 = vsel %vm3215_vm2, %v3109_v14, %v1205_v59 }
 0x204   :  { %v1115_v19 = vmul.f32 %v3149_v8, %v1114_v47  ;;  %v669_v57 = vpop.xlane.xlu0 %668  ;;  %v1123_v62 = vmul.f32 0.5, %v1122_v34  ;;  %v867_v33 = vsub.f32 %v2826_v51, %v3098_v56  ;;  %v1258_v14 = vmul.f32 %v1199_v39, %v874_v12 }
 0x205   :  { %v1575_v2 = vpack.c.bf16 %v1548_v22, %v1547_v50  ;;  %v741_v18 = vmul.f32 0.03125, %v669_v57  ;;  %v3209_v10 = vadd.f32 1e-05, %v845_v30  ;;  %v1259_v3 = vmul.f32 %v1209_v44, %v875_v43 }
 0x206   :  { %v1119_v45 = vsel %vm3189_vm15, %v3149_v8, %v1115_v19  ;;  %v667_v4 = vpop.xlane.xlu2 %666  ;;  %v1124_v20 = vsub.f32 1.5, %v1123_v62  ;;  %v1294_v12 = vmul.f32 %v3061_v1, %v1258_v14  ;;  %vm1216_vm7 = vweird.f32 %v3182_v13 }
 0x207   :  { %v740_v52 = vmul.f32 0.03125, %v667_v4  ;;  %1683 = vmatmul.bf16.gmra.mxu2 %v1575_v2  ;;  %v805_v0 = vsub.f32 %v741_v18, %v773_v40  ;;  %2276 = vrsqrt.f32 %v3209_v10  ;;  %v1250_v7 = vmul.f32 %v1119_v45, %v866_v36  ;;  %v3234_v41 = vpop.eup %2270 }
 0x208   :  { %v1125_v46 = vmul.f32 %v2269_v32, %v1124_v20  ;;  %2278 = vtanh.f32 %v3157_v42  ;;  %v1211_v51 = vmul.f32 %v3234_v41, %v3182_v13  ;;  %v2273_v36 = vpop.eup %2272  ;;  %v1295_v59 = vmul.f32 %v3061_v1, %v1259_v3 }
 0x209   :  { %v804_v5 = vsub.f32 %v740_v52, %v772_v49  ;;  %v837_v37 = vmax.f32 %v805_v0, 0.0  ;;  %v2275_v50 = vpop.eup %2274  ;;  %v1286_v28 = vmul.f32 %v3061_v1, %v1250_v7  ;;  %v1330_v17 = vadd.f32 %v3084_v27, %v1294_v12 }
 0x20a   :  { %v1129_v31 = vsel %vm1128_vm4, %v2269_v32, %v1125_v46  ;;  %v1212_v26 = vmul.f32 %v3234_v41, %v1211_v51  ;;  %v1375_v6 = vpack.c.bf16 %v2275_v50, %v2273_v36  ;;  %vm1217_vm5 = vweird.f32 %v3234_v41 }
 0x20b   :  { %v1484_v58 = vpop.f32.mrf.mxu1  ;;  %v836_v29 = vmax.f32 %v804_v5, 0.0  ;;  %v1251_v25 = vmul.f32 %v1129_v31, %v867_v33  ;;  %v3244_v56 = vadd.f32 1e-05, %v837_v37  ;;  %v1322_v57 = vadd.f32 %v3084_v27, %v1286_v28  ;;  %vm3270_vm8 = vmor %vm1216_vm7, %vm1217_vm5 }
 0x20c   :  { %v1213_v47 = vmul.f32 0.5, %v1212_v26  ;;  %1503 = vmatmul.bf16.gmra.mxu1 %v1375_v6  ;;  %v1485_v24 = vadd.f32 %v2984_v54, %v1484_v58  ;;  %v1331_v30 = vadd.f32 %v3084_v27, %v1295_v59  ;;  %vm1226_vm9 = vweird.f32 %v3209_v10 }
 0x20d   :  { %v3246_v42 = vadd.f32 1e-05, %v836_v29  ;;  %v1287_v55 = vmul.f32 %v3061_v1, %v1251_v25  ;;  %2280 = vrsqrt.f32 %v3244_v56  ;;  %v2277_v15 = vpop.eup %2276  ;;  %v877_v46 = vsub.f32 %v2862_v23, %v3147_v38 }
 0x20e   :  { %v2279_v43 = vpop.eup %2278  ;;  %v1221_v22 = vmul.f32 %v2277_v15, %v3209_v10  ;;  %v1214_v48 = vsub.f32 1.5, %v1213_v47  ;;  %v1549_v18 = vmax.f32 %v1485_v24, 0.0  ;;  %vm1227_vm6 = vweird.f32 %v2277_v15 }
 0x20f   :  { %2282 = vrsqrt.f32 %v3246_v42  ;;  %v1323_v32 = vadd.f32 %v3084_v27, %v1287_v55  ;;  %v1379_v34 = vpack.c.bf16 %v2279_v43, %v3163_v11  ;;  %vm1228_vm10 = vmor %vm1226_vm9, %vm1227_vm6  ;;  %v876_v33 = vsub.f32 %v2858_v63, %v3152_v61 }
 0x210   :  { %v1222_v19 = vmul.f32 %v2277_v15, %v1221_v22  ;;  %v1215_v45 = vmul.f32 %v3234_v41, %v1214_v48  ;;  %vm1146_vm13 = vweird.f32 %v3244_v56  ;;  %v869_v63 = vsub.f32 %v2915_v53, %v3179_v35 }
 0x211   :  { %1523 = vmatmul.bf16.gmra.mxu3 %v1379_v34  ;;  %2284 = vtanh.f32 %v1323_v32  ;;  %vm1136_vm15 = vweird.f32 %v3246_v42  ;;  %v868_v36 = vsub.f32 %v2894_v16, %v3176_v21  ;;  %vm1912_vm1 = vcmask 7168  }
 0x212   :  { %v1223_v49 = vmul.f32 0.5, %v1222_v19  ;;  %2286 = vtanh.f32 %v1322_v57  ;;  %v1219_v13 = vsel %vm3270_vm8, %v3234_v41, %v1215_v45 }
 0x213   :  { %v1486_v2 = vpop.f32.mrf.mxu1  ;;  %v2281_v62 = vpop.eup %2280  ;;  %2288 = vtanh.f32 %v1330_v17  ;;  %v1260_v23 = vmul.f32 %v1219_v13, %v876_v33 }
 0x214   :  { %v1487_v9 = vadd.f32 %v2984_v54, %v1486_v2  ;;  %v1141_v40 = vmul.f32 %v2281_v62, %v3244_v56  ;;  %v1224_v60 = vsub.f32 1.5, %v1223_v49  ;;  %2290 = vtanh.f32 %v1331_v30 }
 0x215   :  { %v2283_v11 = vpop.eup %2282  ;;  %vm1147_vm11 = vweird.f32 %v2281_v62  ;;  %v1296_v26 = vmul.f32 %v3061_v1, %v1260_v23 }
 0x216   :  { %v1550_v4 = vmax.f32 %v1487_v9, 0.0  ;;  %v1131_v20 = vmul.f32 %v2283_v11, %v3246_v42  ;;  %v1142_v52 = vmul.f32 %v2281_v62, %v1141_v40  ;;  %v1225_v0 = vmul.f32 %v2277_v15, %v1224_v60  ;;  %vm1148_vm14 = vmor %vm1146_vm13, %vm1147_vm11 }
 0x217   :  { %v2285_v7 = vpop.eup %2284  ;;  %vm1137_vm12 = vweird.f32 %v2283_v11  ;;  %v1332_v43 = vadd.f32 %v3084_v27, %v1296_v26 }
 0x218   :  { %v1576_v8 = vpack.c.bf16 %v1550_v4, %v1549_v18  ;;  %v1132_v44 = vmul.f32 %v2283_v11, %v1131_v20  ;;  %v1143_v5 = vmul.f32 0.5, %v1142_v52  ;;  %v1229_v37 = vsel %vm1228_vm10, %v2277_v15, %v1225_v0  ;;  %v2287_v29 = vpop.eup %2286  ;;  %vm1138_vm0 = vmor %vm1136_vm15, %vm1137_vm12  ;;  %v3305_v52 = vld [vmem:[%s3560_s8] ss:$0 sm:$0xff] }
 0x219   :  { %v1261_v14 = vmul.f32 %v1229_v37, %v877_v46  ;;  %v1376_v41 = vpack.c.bf16 %v2285_v7, %v2287_v29  ;;  %v2289_v51 = vpop.eup %2288 }
 0x21a   :  { %1688 = vmatmul.bf16.gmra.mxu2 %v1576_v8  ;;  %v1133_v58 = vmul.f32 0.5, %v1132_v44  ;;  %v1144_v31 = vsub.f32 1.5, %v1143_v5  ;;  %v2291_v55 = vpop.eup %2290  ;;  %v3311_v44 = vld [vmem:[%s3561_s9] ss:$0 sm:$0xff] }
 0x21b   :  { %v1489_v10 = vpop.f32.mrf.mxu1  ;;  %v1297_v25 = vmul.f32 %v3061_v1, %v1261_v14  ;;  %v1380_v6 = vpack.c.bf16 %v2291_v55, %v2289_v51 }
 0x21c   :  { %v1134_v38 = vsub.f32 1.5, %v1133_v58  ;;  %v1145_v3 = vmul.f32 %v2281_v62, %v1144_v31  ;;  %1508 = vmatmul.bf16.gmra.mxu1 %v1376_v41  ;;  %v1490_v12 = vadd.f32 %v2984_v54, %v1489_v10 }
 0x21d   :  { %v1333_v53 = vadd.f32 %v3084_v27, %v1297_v25 }
 0x21e   :  { %v1135_v61 = vmul.f32 %v2283_v11, %v1134_v38  ;;  %v1149_v50 = vsel %vm1148_vm14, %v2281_v62, %v1145_v3  ;;  %v1551_v47 = vmax.f32 %v1490_v12, 0.0 }
 0x21f   :  { %v1253_v56 = vmul.f32 %v1149_v50, %v869_v63  ;;  %2292 = vtanh.f32 %v1333_v53 }
 0x220   :  { %v1139_v28 = vsel %vm1138_vm0, %v2283_v11, %v1135_v61 }
 0x221   :  { %v1252_v15 = vmul.f32 %v1139_v28, %v868_v36  ;;  %v1289_v42 = vmul.f32 %v3061_v1, %v1253_v56  ;;  %1528 = vmatmul.bf16.gmra.mxu3 %v1380_v6 }
 0x223   :  { %v1491_v35 = vpop.f32.mrf.mxu1  ;;  %v1288_v21 = vmul.f32 %v3061_v1, %v1252_v15  ;;  %v1325_v32 = vadd.f32 %v3084_v27, %v1289_v42 }
 0x224   :  { %v1492_v16 = vadd.f32 %v2984_v54, %v1491_v35 }
 0x225   :  { %v1324_v59 = vadd.f32 %v3084_v27, %v1288_v21  ;;  %2294 = vtanh.f32 %v1325_v32  ;;  %v2293_v48 = vpop.eup %2292 }
 0x226   :  { %v1552_v22 = vmax.f32 %v1492_v16, 0.0 }
 0x227   :  { %2296 = vtanh.f32 %v1324_v59 }
 0x228   :  { %v1577_v34 = vpack.c.bf16 %v1552_v22, %v1551_v47  ;;  %2298 = vtanh.f32 %v1332_v43 }
 0x22a   :  { %1693 = vmatmul.bf16.gmra.mxu2 %v1577_v34 }
 0x22b   :  { %v1494_v24 = vpop.f32.mrf.mxu1  ;;  %v2295_v19 = vpop.eup %2294 }
 0x22c   :  { %v1495_v17 = vadd.f32 %v2984_v54, %v1494_v24 }
 0x22d   :  { %v2297_v2 = vpop.eup %2296 }
 0x22e   :  { %v2299_v57 = vpop.eup %2298  ;;  %v1377_v1 = vpack.c.bf16 %v2295_v19, %v2297_v2  ;;  %v1553_v27 = vmax.f32 %v1495_v17, 0.0 }
 0x22f   :  { %v1381_v9 = vpack.c.bf16 %v2293_v48, %v2299_v57 }
 0x230   :  { %1513 = vmatmul.bf16.gmra.mxu1 %v1377_v1 }
 0x231   :  { %1533 = vmatmul.bf16.gmra.mxu3 %v1381_v9 }
 0x233   :  { %v1496_v62 = vpop.f32.mrf.mxu1 }
 0x234   :  { %v1497_v49 = vadd.f32 %v2984_v54, %v1496_v62 }
 0x236   :  { %v1554_v30 = vmax.f32 %v1497_v49, 0.0 }
 0x238   :  { %v1578_v11 = vpack.c.bf16 %v1554_v30, %v1553_v27 }
 0x23a   :  { %1698 = vmatmul.bf16.gmra.mxu2 %v1578_v11 }
 0x23b   :  { %v1499_v45 = vpop.f32.mrf.mxu1 }
 0x23c   :  { %v1500_v40 = vadd.f32 %v2984_v54, %v1499_v45 }
 0x23e   :  { %v1555_v60 = vmax.f32 %v1500_v40, 0.0 }
 0x243   :  { %v1501_v18 = vpop.f32.mrf.mxu1 }
 0x244   :  { %v1502_v4 = vadd.f32 %v2984_v54, %v1501_v18 }
 0x246   :  { %v1556_v20 = vmax.f32 %v1502_v4, 0.0 }
 0x248   :  { %v1579_v8 = vpack.c.bf16 %v1556_v20, %v1555_v60 }
 0x24a   :  { %v1664_v39 = vpop.f32.mrf.mxu2  ;;  %1703 = vmatmul.bf16.gmra.mxu2 %v1579_v8 }
 0x24b   :  { %v1665_v0 = vadd.f32 %v3305_v52, %v1664_v39 }
 0x24d   :  { %v1744_v46 = vmax.f32 %v1665_v0, 0.0 }
 0x24f   :  { %v1780_v13 = vmul.f32 %v3311_v44, %v1744_v46 }
 0x251   :  { %1812 = vadd.xlane.f32.xlu1 %v1780_v13 }
 0x252   :  { %v1666_v5 = vpop.f32.mrf.mxu2 }
 0x253   :  { %v1667_v7 = vadd.f32 %v3305_v52, %v1666_v5 }
 0x255   :  { %v1745_v33 = vmax.f32 %v1667_v7, 0.0 }
 0x257   :  { %v1781_v37 = vmul.f32 %v3311_v44, %v1745_v33 }
 0x259   :  { %1814 = vadd.xlane.f32.xlu2 %v1781_v37 }
 0x25a   :  { %v1669_v58 = vpop.f32.mrf.mxu2 }
 0x25b   :  { %v1670_v10 = vadd.f32 %v3305_v52, %v1669_v58  ;;  %v16_v58 = vstv %s3562_s10 }
 0x25c   :  { %17 = vst [vmem:[#allocation3] sm:$0x1] %v16_v58 }
 0x25d   :  { %v1746_v14 = vmax.f32 %v1670_v10, 0.0 }
 0x25f   :  { %v1782_v31 = vmul.f32 %v3311_v44, %v1746_v14 }
 0x261   :  { %1816 = vadd.xlane.f32.xlu0 %v1782_v31 }
 0x262   :  { %v1671_v29 = vpop.f32.mrf.mxu2 }
 0x263   :  { %v1672_v23 = vadd.f32 %v3305_v52, %v1671_v29 }
 0x265   :  { %v1747_v38 = vmax.f32 %v1672_v23, 0.0 }
 0x267   :  { %v1783_v3 = vmul.f32 %v3311_v44, %v1747_v38 }
 0x269   :  { %1818 = vadd.xlane.f32.xlu1 %v1783_v3 }
 0x26a   :  { %v1674_v41 = vpop.f32.mrf.mxu2 }
 0x26b   :  { %v1675_v25 = vadd.f32 %v3305_v52, %v1674_v41 }
 0x26d   :  { %v1748_v51 = vmax.f32 %v1675_v25, 0.0 }
 0x26f   :  { %v1784_v63 = vmul.f32 %v3311_v44, %v1748_v51  ;;  %v2303_v51 = vld [vmem:[%s3558_s6] ss:$0 sm:$0xff] }
 0x271   :  { %1820 = vadd.xlane.f32.xlu2 %v1784_v63 }
 0x272   :  { %v1676_v61 = vpop.f32.mrf.mxu2 }
 0x273   :  { %v1677_v36 = vadd.f32 %v3305_v52, %v1676_v61 }
 0x275   :  { %v1749_v50 = vmax.f32 %v1677_v36, 0.0 }
 0x277   :  { %v1785_v55 = vmul.f32 %v3311_v44, %v1749_v50 }
 0x279   :  { %1822 = vadd.xlane.f32.xlu0 %v1785_v55 }
 0x27a   :  { %v1679_v26 = vpop.f32.mrf.mxu2 }
 0x27b   :  { %v1680_v56 = vadd.f32 %v3305_v52, %v1679_v26 }
 0x27d   :  { %v1750_v28 = vmax.f32 %v1680_v56, 0.0 }
 0x27f   :  { %v1786_v15 = vmul.f32 %v3311_v44, %v1750_v28 }
 0x281   :  { %1824 = vadd.xlane.f32.xlu1 %v1786_v15 }
 0x282   :  { %v1519_v6 = vpop.f32.mrf.mxu3  ;;  %v1681_v12 = vpop.f32.mrf.mxu2 }
 0x283   :  { %v1682_v53 = vadd.f32 %v3305_v52, %v1681_v12  ;;  %v1520_v16 = vadd.f32 %v2984_v54, %v1519_v6 }
 0x285   :  { %v1751_v35 = vmax.f32 %v1682_v53, 0.0  ;;  %v1563_v22 = vmax.f32 %v1520_v16, 0.0 }
 0x287   :  { %v1787_v42 = vmul.f32 %v3311_v44, %v1751_v35 }
 0x289   :  { %1826 = vadd.xlane.f32.xlu2 %v1787_v42  ;;  %v1504_v34 = vpop.f32.mrf.mxu1 }
 0x28a   :  { %v1521_v21 = vpop.f32.mrf.mxu3  ;;  %v1684_v32 = vpop.f32.mrf.mxu2  ;;  %v1505_v1 = vadd.f32 %v2984_v54, %v1504_v34 }
 0x28b   :  { %v1522_v43 = vadd.f32 %v2984_v54, %v1521_v21  ;;  %v1685_v47 = vadd.f32 %v3305_v52, %v1684_v32 }
 0x28c   :  { %v1557_v30 = vmax.f32 %v1505_v1, 0.0 }
 0x28d   :  { %v1564_v59 = vmax.f32 %v1522_v43, 0.0  ;;  %v1752_v24 = vmax.f32 %v1685_v47, 0.0 }
 0x28f   :  { %v1583_v48 = vpack.c.bf16 %v1564_v59, %v1563_v22  ;;  %v1788_v19 = vmul.f32 %v3311_v44, %v1752_v24 }
 0x291   :  { %1723 = vmatmul.bf16.vlgmr.msra.gmra.mxu3 %v1583_v48  ;;  %1828 = vadd.xlane.f32.xlu0 %v1788_v19  ;;  %v1506_v17 = vpop.f32.mrf.mxu1 }
 0x292   :  { %v1686_v2 = vpop.f32.mrf.mxu2  ;;  %v1507_v49 = vadd.f32 %v2984_v54, %v1506_v17 }
 0x293   :  { %v1687_v57 = vadd.f32 %v3305_v52, %v1686_v2 }
 0x294   :  { %v1524_v9 = vpop.f32.mrf.mxu3  ;;  %v1558_v11 = vmax.f32 %v1507_v49, 0.0 }
 0x295   :  { %v1753_v62 = vmax.f32 %v1687_v57, 0.0  ;;  %v1525_v18 = vadd.f32 %v2984_v54, %v1524_v9  ;;  %v3355_v57 = vld [vmem:[#allocation3] ss:$0 sm:$0xff] }
 0x296   :  { %v1580_v45 = vpack.c.bf16 %v1558_v11, %v1557_v30 }
 0x297   :  { %v1789_v27 = vmul.f32 %v3311_v44, %v1753_v62  ;;  %v1565_v0 = vmax.f32 %v1525_v18, 0.0 }
 0x298   :  { %1708 = vmatmul.bf16.gmra.mxu2 %v1580_v45 }
 0x299   :  { %1830 = vadd.xlane.f32.xlu1 %v1789_v27  ;;  %v1509_v20 = vpop.f32.mrf.mxu1 }
 0x29a   :  { %v1510_v33 = vadd.f32 %v2984_v54, %v1509_v20 }
 0x29c   :  { %v1526_v60 = vpop.f32.mrf.mxu3  ;;  %v1559_v23 = vmax.f32 %v1510_v33, 0.0 }
 0x29d   :  { %v1689_v40 = vpop.f32.mrf.mxu2  ;;  %v1527_v8 = vadd.f32 %v2984_v54, %v1526_v60 }
 0x29e   :  { %v1690_v4 = vadd.f32 %v3305_v52, %v1689_v40 }
 0x29f   :  { %v1566_v46 = vmax.f32 %v1527_v8, 0.0 }
 0x2a0   :  { %v1754_v39 = vmax.f32 %v1690_v4, 0.0 }
 0x2a1   :  { %v1584_v5 = vpack.c.bf16 %v1566_v46, %v1565_v0  ;;  %v1511_v14 = vpop.f32.mrf.mxu1 }
 0x2a2   :  { %v1790_v13 = vmul.f32 %v3311_v44, %v1754_v39  ;;  %v1512_v31 = vadd.f32 %v2984_v54, %v1511_v14 }
 0x2a3   :  { %1728 = vmatmul.bf16.gmra.mxu3 %v1584_v5 }
 0x2a4   :  { %1832 = vadd.xlane.f32.xlu2 %v1790_v13  ;;  %v1529_v10 = vpop.f32.mrf.mxu3  ;;  %v1560_v38 = vmax.f32 %v1512_v31, 0.0 }
 0x2a5   :  { %v1691_v7 = vpop.f32.mrf.mxu2  ;;  %v1530_v63 = vadd.f32 %v2303_v51, %v1529_v10 }
 0x2a6   :  { %v1692_v37 = vadd.f32 %v3305_v52, %v1691_v7  ;;  %v1581_v41 = vpack.c.bf16 %v1560_v38, %v1559_v23 }
 0x2a7   :  { %v1567_v26 = vmax.f32 %v1530_v63, 0.0 }
 0x2a8   :  { %v1755_v29 = vmax.f32 %v1692_v37, 0.0  ;;  %1713 = vmatmul.bf16.gmra.mxu2 %v1581_v41 }
 0x2aa   :  { %v1791_v3 = vmul.f32 %v3311_v44, %v1755_v29 }
 0x2ac   :  { %1834 = vadd.xlane.f32.xlu0 %v1791_v3  ;;  %v1531_v36 = vpop.f32.mrf.mxu3 }
 0x2ad   :  { %v1694_v25 = vpop.f32.mrf.mxu2  ;;  %v1514_v50 = vpop.f32.mrf.mxu1  ;;  %v1532_v55 = vadd.f32 %v2303_v51, %v1531_v36 }
 0x2ae   :  { %v1695_v61 = vadd.f32 %v3305_v52, %v1694_v25  ;;  %v1515_v12 = vadd.f32 %v2303_v51, %v1514_v50 }
 0x2af   :  { %v1568_v56 = vmax.f32 %v1532_v55, 0.0 }
 0x2b0   :  { %v1756_v54 = vmax.f32 %v1695_v61, 0.0  ;;  %v1561_v43 = vmax.f32 %v1515_v12, 0.0 }
 0x2b1   :  { %v1585_v15 = vpack.c.bf16 %v1568_v56, %v1567_v26 }
 0x2b2   :  { %v1792_v28 = vmul.f32 %v3311_v44, %v1756_v54 }
 0x2b3   :  { %1733 = vmatmul.bf16.gmra.mxu3 %v1585_v15 }
 0x2b4   :  { %1836 = vadd.xlane.f32.xlu1 %v1792_v28  ;;  %v1534_v35 = vpop.f32.mrf.mxu3 }
 0x2b5   :  { %v1696_v6 = vpop.f32.mrf.mxu2  ;;  %v1516_v42 = vpop.f32.mrf.mxu1  ;;  %v1535_v34 = vadd.f32 %v2303_v51, %v1534_v35 }
 0x2b6   :  { %v1697_v53 = vadd.f32 %v3305_v52, %v1696_v6  ;;  %v1517_v16 = vadd.f32 %v2303_v51, %v1516_v42 }
 0x2b7   :  { %v1569_v1 = vmax.f32 %v1535_v34, 0.0 }
 0x2b8   :  { %v1757_v21 = vmax.f32 %v1697_v53, 0.0  ;;  %v1562_v32 = vmax.f32 %v1517_v16, 0.0 }
 0x2ba   :  { %v1793_v47 = vmul.f32 %v3311_v44, %v1757_v21  ;;  %v1582_v22 = vpack.c.bf16 %v1562_v32, %v1561_v43 }
 0x2bc   :  { %1838 = vadd.xlane.f32.xlu2 %v1793_v47  ;;  %1718 = vmatmul.bf16.gmra.mxu2 %v1582_v22  ;;  %v1536_v48 = vpop.f32.mrf.mxu3 }
 0x2bd   :  { %v1699_v59 = vpop.f32.mrf.mxu2  ;;  %v1537_v19 = vadd.f32 %v2303_v51, %v1536_v48 }
 0x2be   :  { %v1700_v24 = vadd.f32 %v3305_v52, %v1699_v59 }
 0x2bf   :  { %v1570_v9 = vmax.f32 %v1537_v19, 0.0 }
 0x2c0   :  { %v1758_v2 = vmax.f32 %v1700_v24, 0.0 }
 0x2c1   :  { %v1586_v62 = vpack.c.bf16 %v1570_v9, %v1569_v1 }
 0x2c2   :  { %v1794_v17 = vmul.f32 %v3311_v44, %v1758_v2 }
 0x2c3   :  { %1738 = vmatmul.bf16.gmra.mxu3 %v1586_v62 }
 0x2c4   :  { %v1813_v49 = vpop.xlane.xlu1 %1812  ;;  %1840 = vadd.xlane.f32.xlu0 %v1794_v17 }
 0x2c5   :  { %v1880_v27 = vadd.f32 %v3355_v57, %v1813_v49  ;;  %v1701_v30 = vpop.f32.mrf.mxu2 }
 0x2c6   :  { %v1702_v11 = vadd.f32 %v3305_v52, %v1701_v30 }
 0x2c7   :  { %1913 = vst.msk [vmem:[%s3563_s11] sm:$0xff] %vm1912_vm1, %v1880_v27 }
 0x2c8   :  { %v1759_v45 = vmax.f32 %v1702_v11, 0.0 }
 0x2ca   :  { %v1795_v40 = vmul.f32 %v3311_v44, %v1759_v45 }
 0x2cc   :  { %v1815_v18 = vpop.xlane.xlu2 %1814  ;;  %1842 = vadd.xlane.f32.xlu1 %v1795_v40 }
 0x2cd   :  { %v1881_v4 = vadd.f32 %v3355_v57, %v1815_v18  ;;  %v1704_v60 = vpop.f32.mrf.mxu2 }
 0x2ce   :  { %v1705_v20 = vadd.f32 %v3305_v52, %v1704_v60 }
 0x2cf   :  { %1914 = vst.msk [vmem:[%s3563_s11 + $0x8] sm:$0xff] %vm1912_vm1, %v1881_v4 }
 0x2d0   :  { %v1760_v8 = vmax.f32 %v1705_v20, 0.0 }
 0x2d2   :  { %v1796_v39 = vmul.f32 %v3311_v44, %v1760_v8 }
 0x2d4   :  { %v1817_v0 = vpop.xlane.xlu0 %1816  ;;  %1844 = vadd.xlane.f32.xlu2 %v1796_v39 }
 0x2d5   :  { %v1882_v46 = vadd.f32 %v3355_v57, %v1817_v0  ;;  %v1706_v13 = vpop.f32.mrf.mxu2 }
 0x2d6   :  { %v1707_v5 = vadd.f32 %v3305_v52, %v1706_v13 }
 0x2d7   :  { %1915 = vst.msk [vmem:[%s3563_s11 + $0x10] sm:$0xff] %vm1912_vm1, %v1882_v46 }
 0x2d8   :  { %v1761_v7 = vmax.f32 %v1707_v5, 0.0 }
 0x2da   :  { %v1797_v33 = vmul.f32 %v3311_v44, %v1761_v7 }
 0x2dc   :  { %v1819_v37 = vpop.xlane.xlu1 %1818  ;;  %1846 = vadd.xlane.f32.xlu0 %v1797_v33 }
 0x2dd   :  { %v1883_v58 = vadd.f32 %v3355_v57, %v1819_v37 }
 0x2df   :  { %1916 = vst.msk [vmem:[%s3563_s11 + $0x18] sm:$0xff] %vm1912_vm1, %v1883_v58 }
 0x2e4   :  { %v1821_v10 = vpop.xlane.xlu2 %1820 }
 0x2e5   :  { %v1884_v14 = vadd.f32 %v3355_v57, %v1821_v10 }
 0x2e7   :  { %1917 = vst.msk [vmem:[%s3563_s11 + $0x20] sm:$0xff] %vm1912_vm1, %v1884_v14 }
 0x2ec   :  { %v1823_v31 = vpop.xlane.xlu0 %1822 }
 0x2ed   :  { %v1885_v29 = vadd.f32 %v3355_v57, %v1823_v31 }
 0x2ef   :  { %1918 = vst.msk [vmem:[%s3563_s11 + $0x28] sm:$0xff] %vm1912_vm1, %v1885_v29 }
 0x2f4   :  { %v1825_v23 = vpop.xlane.xlu1 %1824 }
 0x2f5   :  { %v1886_v38 = vadd.f32 %v3355_v57, %v1825_v23 }
 0x2f7   :  { %1919 = vst.msk [vmem:[%s3563_s11 + $0x30] sm:$0xff] %vm1912_vm1, %v1886_v38 }
 0x2fc   :  { %v1827_v3 = vpop.xlane.xlu2 %1826 }
 0x2fd   :  { %v1887_v41 = vadd.f32 %v3355_v57, %v1827_v3 }
 0x2ff   :  { %1920 = vst.msk [vmem:[%s3563_s11 + $0x38] sm:$0xff] %vm1912_vm1, %v1887_v41 }
 0x304   :  { %v1829_v25 = vpop.xlane.xlu0 %1828 }
 0x305   :  { %v1888_v51 = vadd.f32 %v3355_v57, %v1829_v25 }
 0x307   :  { %1921 = vst.msk [vmem:[%s3563_s11 + $0x40] sm:$0xff] %vm1912_vm1, %v1888_v51 }
 0x30c   :  { %v1831_v63 = vpop.xlane.xlu1 %1830 }
 0x30d   :  { %v1889_v61 = vadd.f32 %v3355_v57, %v1831_v63 }
 0x30f   :  { %1922 = vst.msk [vmem:[%s3563_s11 + $0x48] sm:$0xff] %vm1912_vm1, %v1889_v61 }
 0x314   :  { %v1724_v36 = vpop.f32.mrf.mxu3 }
 0x315   :  { %v1725_v27 = vadd.f32 %v3305_v52, %v1724_v36 }
 0x317   :  { %v1833_v50 = vpop.xlane.xlu2 %1832  ;;  %v1768_v4 = vmax.f32 %v1725_v27, 0.0 }
 0x318   :  { %v1890_v55 = vadd.f32 %v3355_v57, %v1833_v50 }
 0x319   :  { %v1804_v39 = vmul.f32 %v3311_v44, %v1768_v4 }
 0x31a   :  { %1923 = vst.msk [vmem:[%s3563_s11 + $0x50] sm:$0xff] %vm1912_vm1, %v1890_v55 }
 0x31b   :  { %v1709_v28 = vpop.f32.mrf.mxu2 }
 0x31c   :  { %v1726_v54 = vpop.f32.mrf.mxu3  ;;  %v1710_v15 = vadd.f32 %v3305_v52, %v1709_v28 }
 0x31d   :  { %v1727_v46 = vadd.f32 %v3305_v52, %v1726_v54 }
 0x31e   :  { %v1762_v6 = vmax.f32 %v1710_v15, 0.0 }
 0x31f   :  { %v1835_v26 = vpop.xlane.xlu0 %1834  ;;  %v1769_v10 = vmax.f32 %v1727_v46, 0.0 }
 0x320   :  { %v1891_v56 = vadd.f32 %v3355_v57, %v1835_v26  ;;  %v1798_v12 = vmul.f32 %v3311_v44, %v1762_v6 }
 0x321   :  { %v1805_v41 = vmul.f32 %v3311_v44, %v1769_v10 }
 0x322   :  { %1924 = vst.msk [vmem:[%s3563_s11 + $0x58] sm:$0xff] %vm1912_vm1, %v1891_v56  ;;  %1848 = vadd.xlane.f32.xlu1 %v1798_v12 }
 0x323   :  { %v1711_v16 = vpop.f32.mrf.mxu2 }
 0x324   :  { %v1712_v21 = vadd.f32 %v3305_v52, %v1711_v16 }
 0x326   :  { %v1729_v42 = vpop.f32.mrf.mxu3  ;;  %v1763_v43 = vmax.f32 %v1712_v21, 0.0 }
 0x327   :  { %v1837_v53 = vpop.xlane.xlu1 %1836  ;;  %v1730_v31 = vadd.f32 %v3305_v52, %v1729_v42 }
 0x328   :  { %v1892_v35 = vadd.f32 %v3355_v57, %v1837_v53  ;;  %v1799_v32 = vmul.f32 %v3311_v44, %v1763_v43 }
 0x329   :  { %v1770_v63 = vmax.f32 %v1730_v31, 0.0 }
 0x32a   :  { %1925 = vst.msk [vmem:[%s3563_s11 + $0x60] sm:$0xff] %vm1912_vm1, %v1892_v35  ;;  %1850 = vadd.xlane.f32.xlu2 %v1799_v32 }
 0x32b   :  { %v1714_v34 = vpop.f32.mrf.mxu2  ;;  %v1806_v26 = vmul.f32 %v3311_v44, %v1770_v63 }
 0x32c   :  { %v1715_v24 = vadd.f32 %v3305_v52, %v1714_v34 }
 0x32e   :  { %v1731_v59 = vpop.f32.mrf.mxu3  ;;  %v1764_v48 = vmax.f32 %v1715_v24, 0.0 }
 0x32f   :  { %v1839_v47 = vpop.xlane.xlu2 %1838  ;;  %v1732_v8 = vadd.f32 %v3305_v52, %v1731_v59 }
 0x330   :  { %v1893_v22 = vadd.f32 %v3355_v57, %v1839_v47  ;;  %v1800_v19 = vmul.f32 %v3311_v44, %v1764_v48 }
 0x331   :  { %v1771_v33 = vmax.f32 %v1732_v8, 0.0 }
 0x332   :  { %1926 = vst.msk [vmem:[%s3563_s11 + $0x68] sm:$0xff] %vm1912_vm1, %v1893_v22  ;;  %1852 = vadd.xlane.f32.xlu0 %v1800_v19 }
 0x333   :  { %v1716_v17 = vpop.f32.mrf.mxu2  ;;  %v1807_v23 = vmul.f32 %v3311_v44, %v1771_v33 }
 0x334   :  { %v1717_v62 = vadd.f32 %v3305_v52, %v1716_v17 }
 0x336   :  { %v1734_v9 = vpop.f32.mrf.mxu3  ;;  %v1765_v49 = vmax.f32 %v1717_v62, 0.0 }
 0x337   :  { %v1841_v2 = vpop.xlane.xlu0 %1840  ;;  %v1735_v3 = vadd.f32 %v3305_v52, %v1734_v9 }
 0x338   :  { %v1894_v1 = vadd.f32 %v3355_v57, %v1841_v2  ;;  %v1801_v30 = vmul.f32 %v3311_v44, %v1765_v49 }
 0x339   :  { %v1772_v36 = vmax.f32 %v1735_v3, 0.0 }
 0x33a   :  { %1927 = vst.msk [vmem:[%s3563_s11 + $0x70] sm:$0xff] %vm1912_vm1, %v1894_v1  ;;  %1854 = vadd.xlane.f32.xlu1 %v1801_v30 }
 0x33b   :  { %v1808_v28 = vmul.f32 %v3311_v44, %v1772_v36 }
 0x33e   :  { %v1736_v40 = vpop.f32.mrf.mxu3 }
 0x33f   :  { %v1843_v11 = vpop.xlane.xlu1 %1842  ;;  %v1719_v18 = vpop.f32.mrf.mxu2  ;;  %v1737_v55 = vadd.f32 %v3305_v52, %v1736_v40 }
 0x340   :  { %v1895_v45 = vadd.f32 %v3355_v57, %v1843_v11  ;;  %v1720_v60 = vadd.f32 %v3305_v52, %v1719_v18 }
 0x341   :  { %v1773_v15 = vmax.f32 %v1737_v55, 0.0 }
 0x342   :  { %1928 = vst.msk [vmem:[%s3563_s11 + $0x78] sm:$0xff] %vm1912_vm1, %v1895_v45  ;;  %v1766_v20 = vmax.f32 %v1720_v60, 0.0  ;;  %1860 = vadd.xlane.f32.xlu1 %v1804_v39 }
 0x343   :  { %v1809_v12 = vmul.f32 %v3311_v44, %v1773_v15 }
 0x344   :  { %v1802_v0 = vmul.f32 %v3311_v44, %v1766_v20 }
 0x346   :  { %1856 = vadd.xlane.f32.xlu2 %v1802_v0  ;;  %v1739_v37 = vpop.f32.mrf.mxu3 }
 0x347   :  { %v1845_v13 = vpop.xlane.xlu2 %1844  ;;  %v1721_v7 = vpop.f32.mrf.mxu2  ;;  %v1740_v29 = vadd.f32 %v3305_v52, %v1739_v37 }
 0x348   :  { %v1896_v5 = vadd.f32 %v3355_v57, %v1845_v13  ;;  %v1722_v58 = vadd.f32 %v3305_v52, %v1721_v7 }
 0x349   :  { %v1774_v61 = vmax.f32 %v1740_v29, 0.0 }
 0x34a   :  { %1929 = vst.msk [vmem:[%s3563_s11 + $0x80] sm:$0xff] %vm1912_vm1, %v1896_v5  ;;  %v1767_v14 = vmax.f32 %v1722_v58, 0.0  ;;  %1866 = vadd.xlane.f32.xlu1 %v1807_v23 }
 0x34b   :  { %v1810_v54 = vmul.f32 %v3311_v44, %v1774_v61 }
 0x34c   :  { %v1803_v38 = vmul.f32 %v3311_v44, %v1767_v14 }
 0x34e   :  { %1858 = vadd.xlane.f32.xlu0 %v1803_v38  ;;  %1862 = vadd.xlane.f32.xlu2 %v1805_v41  ;;  %v1741_v50 = vpop.f32.mrf.mxu3 }
 0x34f   :  { %v1847_v25 = vpop.xlane.xlu0 %1846  ;;  %v1742_v56 = vadd.f32 %v3305_v52, %v1741_v50 }
 0x350   :  { %v1897_v51 = vadd.f32 %v3355_v57, %v1847_v25 }
 0x351   :  { %v1775_v6 = vmax.f32 %v1742_v56, 0.0 }
 0x352   :  { %1930 = vst.msk [vmem:[%s3563_s11 + $0x88] sm:$0xff] %vm1912_vm1, %v1897_v51  ;;  %1872 = vadd.xlane.f32.xlu1 %v1810_v54 }
 0x353   :  { %v1811_v53 = vmul.f32 %v3311_v44, %v1775_v6 }
 0x356   :  { %1864 = vadd.xlane.f32.xlu0 %v1806_v26  ;;  %1868 = vadd.xlane.f32.xlu2 %v1808_v28 }
 0x35e   :  { %1870 = vadd.xlane.f32.xlu0 %v1809_v12  ;;  %1874 = vadd.xlane.f32.xlu2 %v1811_v53 }
 0x395   :  { %v1849_v35 = vpop.xlane.xlu1 %1848 }
 0x396   :  { %v1898_v42 = vadd.f32 %v3355_v57, %v1849_v35 }
 0x398   :  { %1931 = vst.msk [vmem:[%s3563_s11 + $0x90] sm:$0xff] %vm1912_vm1, %v1898_v42 }
 0x39d   :  { %v1851_v52 = vpop.xlane.xlu2 %1850 }
 0x39e   :  { %v1899_v16 = vadd.f32 %v3355_v57, %v1851_v52 }
 0x3a0   :  { %1932 = vst.msk [vmem:[%s3563_s11 + $0x98] sm:$0xff] %vm1912_vm1, %v1899_v16 }
 0x3a5   :  { %v1853_v21 = vpop.xlane.xlu0 %1852 }
 0x3a6   :  { %v1900_v44 = vadd.f32 %v3355_v57, %v1853_v21 }
 0x3a8   :  { %1933 = vst.msk [vmem:[%s3563_s11 + $0xa0] sm:$0xff] %vm1912_vm1, %v1900_v44 }
 0x3ad   :  { %v1855_v43 = vpop.xlane.xlu1 %1854 }
 0x3ae   :  { %v1901_v32 = vadd.f32 %v3355_v57, %v1855_v43 }
 0x3b0   :  { %1934 = vst.msk [vmem:[%s3563_s11 + $0xa8] sm:$0xff] %vm1912_vm1, %v1901_v32 }
 0x3b5   :  { %v1861_v47 = vpop.xlane.xlu1 %1860 }
 0x3b6   :  { %v1904_v59 = vadd.f32 %v3355_v57, %v1861_v47 }
 0x3b8   :  { %1937 = vst.msk [vmem:[%s3563_s11 + $0xc0] sm:$0xff] %vm1912_vm1, %v1904_v59 }
 0x3b9   :  { %v1857_v22 = vpop.xlane.xlu2 %1856 }
 0x3ba   :  { %v1902_v34 = vadd.f32 %v3355_v57, %v1857_v22 }
 0x3bc   :  { %1935 = vst.msk [vmem:[%s3563_s11 + $0xb0] sm:$0xff] %vm1912_vm1, %v1902_v34 }
 0x3bd   :  { %v1867_v24 = vpop.xlane.xlu1 %1866 }
 0x3be   :  { %v1907_v19 = vadd.f32 %v3355_v57, %v1867_v24 }
 0x3c0   :  { %1940 = vst.msk [vmem:[%s3563_s11 + $0xd8] sm:$0xff] %vm1912_vm1, %v1907_v19 }
 0x3c1   :  { %v1859_v48 = vpop.xlane.xlu0 %1858  ;;  %v1863_v1 = vpop.xlane.xlu2 %1862 }
 0x3c2   :  { %v1903_v2 = vadd.f32 %v3355_v57, %v1859_v48  ;;  %v1905_v9 = vadd.f32 %v3355_v57, %v1863_v1 }
 0x3c4   :  { %1936 = vst.msk [vmem:[%s3563_s11 + $0xb8] sm:$0xff] %vm1912_vm1, %v1903_v2 }
 0x3c5   :  { %1938 = vst.msk [vmem:[%s3563_s11 + $0xc8] sm:$0xff] %vm1912_vm1, %v1905_v9  ;;  %v1873_v17 = vpop.xlane.xlu1 %1872 }
 0x3c6   :  { %v1910_v49 = vadd.f32 %v3355_v57, %v1873_v17 }
 0x3c8   :  { %1943 = vst.msk [vmem:[%s3563_s11 + $0xf0] sm:$0xff] %vm1912_vm1, %v1910_v49 }
 0x3c9   :  { %v1865_v62 = vpop.xlane.xlu0 %1864  ;;  %v1869_v30 = vpop.xlane.xlu2 %1868 }
 0x3ca   :  { %v1906_v27 = vadd.f32 %v3355_v57, %v1865_v62  ;;  %v1908_v11 = vadd.f32 %v3355_v57, %v1869_v30 }
 0x3cc   :  { %1939 = vst.msk [vmem:[%s3563_s11 + $0xd0] sm:$0xff] %vm1912_vm1, %v1906_v27 }
 0x3cd   :  { %1941 = vst.msk [vmem:[%s3563_s11 + $0xe0] sm:$0xff] %vm1912_vm1, %v1908_v11 }
 0x3d1   :  { %v1871_v45 = vpop.xlane.xlu0 %1870  ;;  %v1875_v18 = vpop.xlane.xlu2 %1874 }
 0x3d2   :  { %v1909_v40 = vadd.f32 %v3355_v57, %v1871_v45  ;;  %v1911_v4 = vadd.f32 %v3355_v57, %v1875_v18 }
 0x3d4   :  { %1942 = vst.msk [vmem:[%s3563_s11 + $0xe8] sm:$0xff] %vm1912_vm1, %v1909_v40 }
 0x3d5   :  { %1944 = vst.msk [vmem:[%s3563_s11 + $0xf8] sm:$0xff] %vm1912_vm1, %v1911_v4 }

</bundles_post_ra>
